<compile_context>
chip_gen: v7x
topology: tpu7x:2x2x1
jax: 0.10.0
libtpu: 0.0.40
codegen_flags: <defaults>
</compile_context>

<pallas_src>
import math
from functools import partial

import jax
import jax.numpy as jnp
from jax.experimental import pallas as pl
from jax.experimental.pallas import tpu as pltpu


# ----------------------------------------------------------------------------
# Fused decoder kernel: one grid step == one batch element, all layers
# ----------------------------------------------------------------------------

def _decoder_kernel(heads, emit_logits,
                    emb_ref, pe_ref, enc_ref, btrg_ref, bsrc_ref,
                    cw_ref, aw_ref, vec_ref, fw1_ref, fb1_ref, fw2_ref,
                    hw_ref, hb_ref, *out_refs):
    sm_ref = out_refs[0]
    NL = aw_ref.shape[0]
    E = pe_ref.shape[-1]
    hd = E // heads
    L = emb_ref.shape[1]
    Ls = enc_ref.shape[1]

    # ---- embedding-combine linear + positional encoding (combine_b folded) --
    emb = emb_ref[0].astype(jnp.float32)                         # (L, K*E)
    x = jnp.dot(emb, cw_ref[...], preferred_element_type=jnp.float32) + pe_ref[0]

    enc = enc_ref[0].astype(jnp.float32)                         # (Ls, E)

    # ---- hoisted constants: head lane masks + stacked additive mask biases --
    lane = jax.lax.broadcasted_iota(jnp.int32, (heads, E), 1)
    hidx = jax.lax.broadcasted_iota(jnp.int32, (heads, E), 0)
    head_mask = ((lane >= hidx * hd) & (lane < (hidx + 1) * hd)).astype(jnp.float32)
    hm3 = head_mask[:, None, :]                                  # (heads, 1, E)

    btrg_s = jnp.broadcast_to(btrg_ref[0][None], (heads, L, L)).reshape(heads * L, L)
    bsrc_s = jnp.broadcast_to(bsrc_ref[0][None], (heads, L, Ls)).reshape(heads * L, Ls)

    def mha(q, K, V, bias_s, woT, bo):
        # q already projected + pre-scaled by 1/sqrt(E); K, V projected. (*, E)
        q_stack = (q[None] * hm3).reshape(heads * L, E)          # (h*L, E)
        energy = jax.lax.dot_general(                            # Q_h @ K_h^T
            q_stack, K, (((1,), (1,)), ((), ())),
            preferred_element_type=jnp.float32)                  # (h*L, Lk)
        attn = jax.nn.softmax(energy + bias_s, axis=-1)
        ctx = jnp.dot(attn, V, preferred_element_type=jnp.float32)   # (h*L, E)
        # pick each head's own lanes and sum -> the sum IS the concat
        out = jnp.sum(ctx.reshape(heads, L, E) * hm3, axis=0)    # (L, E)
        return jnp.dot(out, woT, preferred_element_type=jnp.float32) + bo

    def add_ln(a, b, g, beta):
        s = a + b
        mu = jnp.mean(s, axis=-1, keepdims=True)
        var = jnp.mean(jnp.square(s - mu), axis=-1, keepdims=True)
        return (s - mu) * jax.lax.rsqrt(var + 1e-5) * g + beta

    # ---- decoder layers, unrolled in-kernel ---------------------------------
    for l in range(NL):
        vecs = vec_ref[l]                                        # (9, E)
        sa_bo, ln0_g, ln0_b = vecs[0:1], vecs[1:2], vecs[2:3]
        ca_bo, ln1_g, ln1_b = vecs[3:4], vecs[4:5], vecs[5:6]
        ln2_g, ln2_b, ff_b2 = vecs[6:7], vecs[7:8], vecs[8:9]
        W = aw_ref[l]                                            # (E, 8E) slab

        # masked self-attention: fused QKV projection (one matmul)
        qkv = jnp.dot(x, W[:, 0:3 * E], preferred_element_type=jnp.float32)
        a = mha(qkv[:, 0:E], qkv[:, E:2 * E], qkv[:, 2 * E:3 * E],
                btrg_s, W[:, 3 * E:4 * E], sa_bo)
        q1 = add_ln(a, x, ln0_g, ln0_b)

        # cross-attention over encoder output: Q on q1, fused KV on enc
        q_c = jnp.dot(q1, W[:, 4 * E:5 * E], preferred_element_type=jnp.float32)
        kv = jnp.dot(enc, W[:, 5 * E:7 * E], preferred_element_type=jnp.float32)
        a2 = mha(q_c, kv[:, 0:E], kv[:, E:2 * E],
                 bsrc_s, W[:, 7 * E:8 * E], ca_bo)
        x2 = add_ln(a2, q1, ln1_g, ln1_b)

        # feed-forward + add&norm
        f = jnp.maximum(
            jnp.dot(x2, fw1_ref[l], preferred_element_type=jnp.float32)
            + fb1_ref[l], 0.0)
        f = jnp.dot(f, fw2_ref[l], preferred_element_type=jnp.float32) + ff_b2
        x = add_ln(f, x2, ln2_g, ln2_b)

    # ---- stacked output heads + two-segment softmax on the 2C lane slab -----
    twoc = hb_ref.shape[-1]
    C = twoc // 2
    logits = jnp.dot(x, hw_ref[...], preferred_element_type=jnp.float32) + hb_ref[...]

    seg = jax.lax.broadcasted_iota(jnp.int32, (1, twoc), 1) < C      # half-1 lanes
    neg = jnp.float32(-jnp.inf)
    m1 = jnp.max(jnp.where(seg, logits, neg), axis=-1, keepdims=True)
    m2 = jnp.max(jnp.where(seg, neg, logits), axis=-1, keepdims=True)
    e = jnp.exp(logits - jnp.where(seg, m1, m2))
    z1 = jnp.sum(jnp.where(seg, e, 0.0), axis=-1, keepdims=True)
    z2 = jnp.sum(jnp.where(seg, 0.0, e), axis=-1, keepdims=True)
    sm_ref[0] = (e / jnp.where(seg, z1, z2)).astype(sm_ref.dtype)

    if emit_logits:                          # only requested when L == 1
        out_refs[1][0] = logits.astype(out_refs[1].dtype)


# ----------------------------------------------------------------------------
# Wrapper: weight packing + single pallas_call + JAX glue
# ----------------------------------------------------------------------------

def positional_encoding(seq_len, embed_size):
    position = jnp.arange(seq_len, dtype=jnp.float32)[:, None]
    div_term = jnp.exp(
        jnp.arange(0, embed_size, 2, dtype=jnp.float32)
        * (-math.log(10000.0) / embed_size))
    pe = jnp.zeros((seq_len, embed_size), jnp.float32)
    pe = pe.at[:, 0::2].set(jnp.sin(position * div_term))
    pe = pe.at[:, 1::2].set(jnp.cos(position * div_term))
    return pe[None]   # (1, seq_len, E)


def _pack_params(params, heads):
    """Pre-transpose / block-diagonalize / fuse / stack weights for the kernel."""
    E = params["combine_b"].shape[-1]
    inv_sqrt_e = jnp.float32(1.0 / math.sqrt(E))
    eye = jnp.eye(heads, dtype=jnp.float32)

    def bd(w):  # per-head (hd,hd) Linear -> block-diag (E,E); x @ bd == x_h @ w.T
        return jnp.kron(eye, w.T)

    aw, vecs, fw1, fb1, fw2 = [], [], [], [], []
    for lyr in params["layers"]:
        sa, ca = lyr["self_attn"], lyr["cross_attn"]
        sa_qkv = jnp.concatenate(
            [bd(sa["wq"]) * inv_sqrt_e, bd(sa["wk"]), bd(sa["wv"])], axis=1)  # (E,3E)
        ca_kv = jnp.concatenate([bd(ca["wk"]), bd(ca["wv"])], axis=1)         # (E,2E)
        aw.append(jnp.concatenate(
            [sa_qkv, sa["wo"].T, bd(ca["wq"]) * inv_sqrt_e, ca_kv, ca["wo"].T],
            axis=1))                                                          # (E,8E)
        vecs.append(jnp.concatenate(
            [sa["bo"], lyr["norm_g"], lyr["norm_b"],
             ca["bo"], lyr["norm1_g"], lyr["norm1_b"],
             lyr["norm2_g"], lyr["norm2_b"], lyr["ff_b2"]], axis=0))
        fw1.append(lyr["ff_w1"].T)
        fb1.append(lyr["ff_b1"])
        fw2.append(lyr["ff_w2"].T)

    return {
        "attn_w": jnp.stack(aw),                                   # (NL, E, 8E)
        "vecs": jnp.stack(vecs),                                   # (NL, 9, E)
        "ff_w1T": jnp.stack(fw1),                                  # (NL, E, F)
        "ff_b1": jnp.stack(fb1),                                   # (NL, 1, F)
        "ff_w2T": jnp.stack(fw2),                                  # (NL, F, E)
        "combine_wT": params["combine_w"].T,                       # (2E, E)
        "heads_wT": jnp.concatenate(
            [params["fc1_w"], params["fc2_w"]], axis=0).T,         # (E, 2C)
        "heads_b": jnp.concatenate(
            [params["fc1_b"], params["fc2_b"]], axis=-1),          # (1, 2C)
    }


def decoder_forward(params, x_idx, enc_out, src_mask, trg_mask, heads):
    """Mirrors Decoder.forward (dropout is identity: eval / p=0)."""
    B, L, K = x_idx.shape
    E = params["codebook_embedding"].shape[1]
    NL = len(params["layers"])
    C = params["fc1_w"].shape[0]
    F = params["layers"][0]["ff_w1"].shape[0]
    Ls = enc_out.shape[1]

    p = _pack_params(params, heads)
    emb = jnp.take(params["codebook_embedding"], x_idx,
                   axis=0).reshape(B, L, K * E)
    pe_b = positional_encoding(L, E) + params["combine_b"][None]   # pe + bias

    # Additive mask biases (0 keep / -1e20 masked) — no compare/select in-kernel.
    btrg = jnp.where(trg_mask != 0, 0.0, -1e20).astype(jnp.float32)
    bsrc = jnp.where(src_mask != 0, 0.0, -1e20).astype(jnp.float32)

    emit_logits = (L == 1)   # raw logits are dead when L > 1 (reference returns softmax)
    out_shapes = [jax.ShapeDtypeStruct((B, L, 2 * C), jnp.float32)]
    out_specs = [pl.BlockSpec((1, L, 2 * C), lambda b: (b, 0, 0))]
    if emit_logits:
        out_shapes.append(jax.ShapeDtypeStruct((B, L, 2 * C), jnp.float32))
        out_specs.append(pl.BlockSpec((1, L, 2 * C), lambda b: (b, 0, 0)))

    outs = pl.pallas_call(
        partial(_decoder_kernel, heads, emit_logits),
        out_shape=tuple(out_shapes),
        grid=(B,),
        in_specs=[
            pl.BlockSpec((1, L, K * E), lambda b: (b, 0, 0)),      # emb
            pl.BlockSpec((1, L, E), lambda b: (0, 0, 0)),          # pe + combine_b
            pl.BlockSpec((1, Ls, E), lambda b: (b, 0, 0)),         # enc_out
            pl.BlockSpec((1, L, L), lambda b: (b, 0, 0)),          # trg bias
            pl.BlockSpec((1, L, Ls), lambda b: (b, 0, 0)),         # src bias
            pl.BlockSpec((K * E, E), lambda b: (0, 0)),            # combine_wT
            pl.BlockSpec((NL, E, 8 * E), lambda b: (0, 0, 0)),     # attn_w slab
            pl.BlockSpec((NL, 9, E), lambda b: (0, 0, 0)),         # per-layer vecs
            pl.BlockSpec((NL, E, F), lambda b: (0, 0, 0)),         # ff_w1T
            pl.BlockSpec((NL, 1, F), lambda b: (0, 0, 0)),         # ff_b1
            pl.BlockSpec((NL, F, E), lambda b: (0, 0, 0)),         # ff_w2T
            pl.BlockSpec((E, 2 * C), lambda b: (0, 0)),            # heads_wT
            pl.BlockSpec((1, 2 * C), lambda b: (0, 0)),            # heads_b
        ],
        out_specs=tuple(out_specs),
        compiler_params=pltpu.CompilerParams(
            dimension_semantics=("parallel",)),
    )(emb, pe_b, enc_out, btrg, bsrc,
      p["combine_wT"], p["attn_w"], p["vecs"],
      p["ff_w1T"], p["ff_b1"], p["ff_w2T"],
      p["heads_wT"], p["heads_b"])

    if emit_logits:
        sm_all, logits_all = outs
    else:
        sm_all = outs[0] if isinstance(outs, (tuple, list)) else outs
        logits_all = None

    s1, s2 = sm_all[:, :, :C], sm_all[:, :, C:]

    # Tail mirrors the PyTorch module exactly (when seq_len > 1, the "logits"
    # outputs are the softmax slices — that is what the reference returns).
    if L > 1:
        fs1, lo1 = s1[:, 1:, :], s1[:, 1:, :]
        fs2, lo2 = s2[:, 1:, :], s2[:, 1:, :]
        offset = 1
    else:
        l1, l2 = logits_all[:, :, :C], logits_all[:, :, C:]
        fs1, lo1 = s1, l1
        fs2, lo2 = s2, l2
        offset = 0

    am1 = jnp.argmax(s1, axis=-1)[:, 1:]
    am2 = jnp.argmax(s2, axis=-1)[:, 1:]

    softmax_out = jnp.concatenate((fs1, fs2), axis=1)
    argmax_out = jnp.concatenate((am1, am2), axis=1)
    logits_out = jnp.concatenate((lo1, lo2), axis=1)
    return softmax_out, argmax_out, offset, logits_out


# ----------------------------------------------------------------------------
# Parameter init (matches the PyTorch module's layout)
# ----------------------------------------------------------------------------

def init_params(key, code_book_len, embed_size, num_layers, heads,
                forward_expansion):
    hd = embed_size // heads
    keys = iter(jax.random.split(key, 256))

    def nrm(shape, scale=0.05):
        return jax.random.normal(next(keys), shape, jnp.float32) * scale

    def attn_params():
        return {
            "wq": nrm((hd, hd)),
            "wk": nrm((hd, hd)),
            "wv": nrm((hd, hd)),
            "wo": nrm((embed_size, embed_size)),
            "bo": nrm((1, embed_size)),
        }

    params = {
        "codebook_embedding": nrm((code_book_len, embed_size), 0.1),
        "combine_w": nrm((embed_size, 2 * embed_size)),
        "combine_b": nrm((1, embed_size)),
        "fc1_w": nrm((code_book_len, embed_size)),
        "fc1_b": nrm((1, code_book_len)),
        "fc2_w": nrm((code_book_len, embed_size)),
        "fc2_b": nrm((1, code_book_len)),
        "layers": [],
    }
    F = forward_expansion * embed_size
    for _ in range(num_layers):
        params["layers"].append({
            "self_attn": attn_params(),
            "norm_g": jnp.ones((1, embed_size), jnp.float32),
            "norm_b": jnp.zeros((1, embed_size), jnp.float32),
            "cross_attn": attn_params(),
            "norm1_g": jnp.ones((1, embed_size), jnp.float32),
            "norm1_b": jnp.zeros((1, embed_size), jnp.float32),
            "norm2_g": jnp.ones((1, embed_size), jnp.float32),
            "norm2_b": jnp.zeros((1, embed_size), jnp.float32),
            "ff_w1": nrm((F, embed_size)),
            "ff_b1": nrm((1, F)),
            "ff_w2": nrm((embed_size, F)),
            "ff_b2": nrm((1, embed_size)),
        })
    return params


# ----------------------------------------------------------------------------
# Pure-JAX reference (mirrors the PyTorch ops 1:1) — used for validation
# ----------------------------------------------------------------------------

def _reference_forward(params, x_idx, enc_out, src_mask, trg_mask, heads):
    B, L, K = x_idx.shape
    E = params["codebook_embedding"].shape[1]
    hd = E // heads

    def attention(values, keys, query, mask, ap):
        Lk, Lq = keys.shape[1], query.shape[1]
        v = values.reshape(B, Lk, heads, hd) @ ap["wv"].T
        k = keys.reshape(B, Lk, heads, hd) @ ap["wk"].T
        q = query.reshape(B, Lq, heads, hd) @ ap["wq"].T
        energy = jnp.einsum("bqhd,bkhd->bhqk", q, k)
        energy = jnp.where(mask[:, None] == 0, jnp.float32(-1e20), energy)
        attn = jax.nn.softmax(energy / jnp.sqrt(jnp.float32(E)), axis=-1)
        out = jnp.einsum("bhqk,bkhd->bqhd", attn, v).reshape(B, Lq, E)
        return out @ ap["wo"].T + ap["bo"]

    def layer_norm(x, g, b):
        mu = jnp.mean(x, axis=-1, keepdims=True)
        var = jnp.mean(jnp.square(x - mu), axis=-1, keepdims=True)
        return (x - mu) * jax.lax.rsqrt(var + 1e-5) * g + b

    emb = jnp.take(params["codebook_embedding"], x_idx,
                   axis=0).reshape(B, L, K * E)
    h = emb @ params["combine_w"].T + params["combine_b"] \
        + positional_encoding(L, E)
    for lyr in params["layers"]:
        a = attention(h, h, h, trg_mask, lyr["self_attn"])
        q = layer_norm(a + h, lyr["norm_g"], lyr["norm_b"])
        a2 = attention(enc_out, enc_out, q, src_mask, lyr["cross_attn"])
        x2 = layer_norm(a2 + q, lyr["norm1_g"], lyr["norm1_b"])
        f = jnp.maximum(x2 @ lyr["ff_w1"].T + lyr["ff_b1"], 0.0)
        f = f @ lyr["ff_w2"].T + lyr["ff_b2"]
        h = layer_norm(f + x2, lyr["norm2_g"], lyr["norm2_b"])
    l1 = h @ params["fc1_w"].T + params["fc1_b"]
    l2 = h @ params["fc2_w"].T + params["fc2_b"]
    s1 = jax.nn.softmax(l1, axis=-1)
    s2 = jax.nn.softmax(l2, axis=-1)
    if L > 1:
        fs1, lo1 = s1[:, 1:, :], s1[:, 1:, :]
        fs2, lo2 = s2[:, 1:, :], s2[:, 1:, :]
        offset = 1
    else:
        fs1, lo1 = s1, l1
        fs2, lo2 = s2, l2
        offset = 0
    am1 = jnp.argmax(s1, axis=-1)[:, 1:]
    am2 = jnp.argmax(s2, axis=-1)[:, 1:]
    return (jnp.concatenate((fs1, fs2), axis=1),
            jnp.concatenate((am1, am2), axis=1),
            offset,
            jnp.concatenate((lo1, lo2), axis=1))


# ----------------------------------------------------------------------------
# Main
# ----------------------------------------------------------------------------

if __name__ == "__main__":
    code_book_len = 64
    embed_size = 32
    num_layers = 2
    heads = 4
    forward_expansion = 2
    B, seq_len, num_codebooks = 2, 8, 2
    src_len = 8

    root = jax.random.PRNGKey(0)
    k_par, k_idx, k_enc = jax.random.split(root, 3)

    params = init_params(k_par, code_book_len, embed_size, num_layers, heads,
                         forward_expansion)

    # x: integer codebook indices (B, seq, 2); enc_out: (B, src_len, E)
    x_idx = jax.random.randint(k_idx, (B, seq_len, num_codebooks), 0,
                               code_book_len, dtype=jnp.int32)
    enc_out = jax.random.normal(k_enc, (B, src_len, embed_size), jnp.float32)

    # trg_mask: causal; src_mask: all ones. 1=keep, 0=mask (shared over heads).
    trg_mask = jnp.tril(jnp.ones((seq_len, seq_len), jnp.float32))
    trg_mask = jnp.broadcast_to(trg_mask[None], (B, seq_len, seq_len))
    src_mask = jnp.ones((B, seq_len, src_len), jnp.float32)

    fwd = jax.jit(partial(decoder_forward, heads=heads))
    softmax_out, argmax_out, offset, logits_out = fwd(
        params, x_idx, enc_out, src_mask, trg_mask)
    jax.block_until_ready((softmax_out, argmax_out, logits_out))

    # Shape checks (match the PyTorch path for seq_len > 1).
    assert softmax_out.shape == (B, 2 * (seq_len - 1), code_book_len)
    assert argmax_out.shape == (B, 2 * (seq_len - 1))
    assert logits_out.shape == (B, 2 * (seq_len - 1), code_book_len)
    assert int(offset) == 1
    assert bool(jnp.allclose(jnp.sum(softmax_out, axis=-1), 1.0, atol=1e-4))

    # Numerical check against a pure-JAX mirror of the PyTorch module.
    with jax.default_matmul_precision("highest"):
        ref_sm, ref_am, ref_off, ref_lg = _reference_forward(
            params, x_idx, enc_out, src_mask, trg_mask, heads)
    assert bool(jnp.allclose(softmax_out, ref_sm, atol=1e-4, rtol=1e-4))
    assert bool(jnp.allclose(logits_out, ref_lg, atol=1e-4, rtol=1e-4))
    assert bool(jnp.array_equal(argmax_out, ref_am))
    assert int(offset) == ref_off

    print("KERNEL_OK")
</pallas_src>

<mosaic_0001>
module attributes {stable_mosaic.version = 11 : i64} {
  func.func @_decoder_kernel(%arg0: i32, %arg1: memref<1x8x64xf32, #tpu.memory_space<vmem>>, %arg2: memref<1x8x32xf32, #tpu.memory_space<vmem>>, %arg3: memref<1x8x32xf32, #tpu.memory_space<vmem>>, %arg4: memref<1x8x8xf32, #tpu.memory_space<vmem>>, %arg5: memref<1x8x8xf32, #tpu.memory_space<vmem>>, %arg6: memref<64x32xf32, #tpu.memory_space<vmem>>, %arg7: memref<2x32x256xf32, #tpu.memory_space<vmem>>, %arg8: memref<2x9x32xf32, #tpu.memory_space<vmem>>, %arg9: memref<2x32x64xf32, #tpu.memory_space<vmem>>, %arg10: memref<2x1x64xf32, #tpu.memory_space<vmem>>, %arg11: memref<2x64x32xf32, #tpu.memory_space<vmem>>, %arg12: memref<32x128xf32, #tpu.memory_space<vmem>>, %arg13: memref<1x128xf32, #tpu.memory_space<vmem>>, %arg14: memref<1x8x128xf32, #tpu.memory_space<vmem>>) attributes {dimension_semantics = [#tpu.dimension_semantics<parallel>], iteration_bounds = array<i64: 2>, scalar_prefetch = 0 : i64, scratch_operands = 0 : i64, tpu.core_type = #tpu.core_type<tc>, window_params = [{transform_indices = @transform_0, window_bounds = array<i64: 1, 8, 64>}, {pipeline_mode = #tpu.pipeline_mode<synchronous>, transform_indices = @transform_1, window_bounds = array<i64: 1, 8, 32>}, {transform_indices = @transform_2, window_bounds = array<i64: 1, 8, 32>}, {transform_indices = @transform_3, window_bounds = array<i64: 1, 8, 8>}, {transform_indices = @transform_4, window_bounds = array<i64: 1, 8, 8>}, {pipeline_mode = #tpu.pipeline_mode<synchronous>, transform_indices = @transform_5, window_bounds = array<i64: 64, 32>}, {pipeline_mode = #tpu.pipeline_mode<synchronous>, transform_indices = @transform_6, window_bounds = array<i64: 2, 32, 256>}, {pipeline_mode = #tpu.pipeline_mode<synchronous>, transform_indices = @transform_7, window_bounds = array<i64: 2, 9, 32>}, {pipeline_mode = #tpu.pipeline_mode<synchronous>, transform_indices = @transform_8, window_bounds = array<i64: 2, 32, 64>}, {pipeline_mode = #tpu.pipeline_mode<synchronous>, transform_indices = @transform_9, window_bounds = array<i64: 2, 1, 64>}, {pipeline_mode = #tpu.pipeline_mode<synchronous>, transform_indices = @transform_10, window_bounds = array<i64: 2, 64, 32>}, {pipeline_mode = #tpu.pipeline_mode<synchronous>, transform_indices = @transform_11, window_bounds = array<i64: 32, 128>}, {pipeline_mode = #tpu.pipeline_mode<synchronous>, transform_indices = @transform_12, window_bounds = array<i64: 1, 128>}, {transform_indices = @transform_13, window_bounds = array<i64: 1, 8, 128>}]} {
    %c0 = arith.constant 0 : index
    %c0_0 = arith.constant 0 : index
    %c0_1 = arith.constant 0 : index
    %0 = vector.load %arg1[%c0, %c0_0, %c0_1] : memref<1x8x64xf32, #tpu.memory_space<vmem>>, vector<1x8x64xf32>
    %1 = vector.shape_cast %0 : vector<1x8x64xf32> to vector<8x64xf32>
    %c0_2 = arith.constant 0 : index
    %c0_3 = arith.constant 0 : index
    %2 = vector.load %arg6[%c0_2, %c0_3] : memref<64x32xf32, #tpu.memory_space<vmem>>, vector<64x32xf32>
    %cst = arith.constant dense<0.000000e+00> : vector<8x32xf32>
    %3 = tpu.matmul %1, %2, %cst {dimension_numbers = #tpu.dot_dimension_numbers<[1], [0], [0], [1], [0, 0, 1, 1], [], []>} : vector<8x64xf32>, vector<64x32xf32>, vector<8x32xf32> -> vector<8x32xf32>
    %c0_4 = arith.constant 0 : index
    %c0_5 = arith.constant 0 : index
    %c0_6 = arith.constant 0 : index
    %4 = vector.load %arg2[%c0_4, %c0_5, %c0_6] : memref<1x8x32xf32, #tpu.memory_space<vmem>>, vector<1x8x32xf32>
    %5 = vector.shape_cast %4 : vector<1x8x32xf32> to vector<8x32xf32>
    %6 = arith.addf %3, %5 : vector<8x32xf32>
    %c0_7 = arith.constant 0 : index
    %c0_8 = arith.constant 0 : index
    %c0_9 = arith.constant 0 : index
    %7 = vector.load %arg3[%c0_7, %c0_8, %c0_9] : memref<1x8x32xf32, #tpu.memory_space<vmem>>, vector<1x8x32xf32>
    %8 = vector.shape_cast %7 : vector<1x8x32xf32> to vector<8x32xf32>
    %9 = tpu.iota {dimensions = array<i32: 1>} : vector<4x32xi32>
    %10 = tpu.iota {dimensions = array<i32: 0>} : vector<4x32xi32>
    %c8_i32 = arith.constant 8 : i32
    %11 = vector.broadcast %c8_i32 : i32 to vector<4x32xi32>
    %12 = arith.muli %10, %11 : vector<4x32xi32>
    %13 = arith.cmpi sge, %9, %12 : vector<4x32xi32>
    %c1_i32 = arith.constant 1 : i32
    %14 = vector.broadcast %c1_i32 : i32 to vector<4x32xi32>
    %15 = arith.addi %10, %14 : vector<4x32xi32>
    %c8_i32_10 = arith.constant 8 : i32
    %16 = vector.broadcast %c8_i32_10 : i32 to vector<4x32xi32>
    %17 = arith.muli %15, %16 : vector<4x32xi32>
    %18 = arith.cmpi slt, %9, %17 : vector<4x32xi32>
    %19 = arith.andi %13, %18 : vector<4x32xi1>
    %20 = arith.extui %19 : vector<4x32xi1> to vector<4x32xi32>
    %21 = arith.sitofp %20 : vector<4x32xi32> to vector<4x32xf32>
    %22 = vector.shape_cast %21 : vector<4x32xf32> to vector<4x1x32xf32>
    %c0_11 = arith.constant 0 : index
    %c0_12 = arith.constant 0 : index
    %c0_13 = arith.constant 0 : index
    %23 = vector.load %arg4[%c0_11, %c0_12, %c0_13] : memref<1x8x8xf32, #tpu.memory_space<vmem>>, vector<1x8x8xf32>
    %24 = vector.shape_cast %23 : vector<1x8x8xf32> to vector<8x8xf32>
    %25 = vector.shape_cast %24 : vector<8x8xf32> to vector<1x8x8xf32>
    %26 = vector.shape_cast %25 : vector<1x8x8xf32> to vector<1x8x8xf32>
    %27 = vector.broadcast %26 : vector<1x8x8xf32> to vector<4x8x8xf32>
    %28 = vector.shape_cast %27 : vector<4x8x8xf32> to vector<32x8xf32>
    %c0_14 = arith.constant 0 : index
    %c0_15 = arith.constant 0 : index
    %c0_16 = arith.constant 0 : index
    %29 = vector.load %arg5[%c0_14, %c0_15, %c0_16] : memref<1x8x8xf32, #tpu.memory_space<vmem>>, vector<1x8x8xf32>
    %30 = vector.shape_cast %29 : vector<1x8x8xf32> to vector<8x8xf32>
    %31 = vector.shape_cast %30 : vector<8x8xf32> to vector<1x8x8xf32>
    %32 = vector.shape_cast %31 : vector<1x8x8xf32> to vector<1x8x8xf32>
    %33 = vector.broadcast %32 : vector<1x8x8xf32> to vector<4x8x8xf32>
    %34 = vector.shape_cast %33 : vector<4x8x8xf32> to vector<32x8xf32>
    %c0_17 = arith.constant 0 : index
    %c0_18 = arith.constant 0 : index
    %c0_19 = arith.constant 0 : index
    %35 = vector.load %arg8[%c0_17, %c0_18, %c0_19] : memref<2x9x32xf32, #tpu.memory_space<vmem>>, vector<1x9x32xf32>
    %36 = vector.shape_cast %35 : vector<1x9x32xf32> to vector<9x32xf32>
    %37 = vector.extract_strided_slice %36 {offsets = [0, 0], sizes = [1, 32], strides = [1, 1]} : vector<9x32xf32> to vector<1x32xf32>
    %38 = vector.extract_strided_slice %36 {offsets = [1, 0], sizes = [1, 32], strides = [1, 1]} : vector<9x32xf32> to vector<1x32xf32>
    %39 = vector.extract_strided_slice %36 {offsets = [2, 0], sizes = [1, 32], strides = [1, 1]} : vector<9x32xf32> to vector<1x32xf32>
    %40 = vector.extract_strided_slice %36 {offsets = [3, 0], sizes = [1, 32], strides = [1, 1]} : vector<9x32xf32> to vector<1x32xf32>
    %41 = vector.extract_strided_slice %36 {offsets = [4, 0], sizes = [1, 32], strides = [1, 1]} : vector<9x32xf32> to vector<1x32xf32>
    %42 = vector.extract_strided_slice %36 {offsets = [5, 0], sizes = [1, 32], strides = [1, 1]} : vector<9x32xf32> to vector<1x32xf32>
    %43 = vector.extract_strided_slice %36 {offsets = [6, 0], sizes = [1, 32], strides = [1, 1]} : vector<9x32xf32> to vector<1x32xf32>
    %44 = vector.extract_strided_slice %36 {offsets = [7, 0], sizes = [1, 32], strides = [1, 1]} : vector<9x32xf32> to vector<1x32xf32>
    %45 = vector.extract_strided_slice %36 {offsets = [8, 0], sizes = [1, 32], strides = [1, 1]} : vector<9x32xf32> to vector<1x32xf32>
    %c0_20 = arith.constant 0 : index
    %c0_21 = arith.constant 0 : index
    %c0_22 = arith.constant 0 : index
    %46 = vector.load %arg7[%c0_20, %c0_21, %c0_22] : memref<2x32x256xf32, #tpu.memory_space<vmem>>, vector<1x32x256xf32>
    %47 = vector.shape_cast %46 : vector<1x32x256xf32> to vector<32x256xf32>
    %48 = vector.extract_strided_slice %47 {offsets = [0, 0], sizes = [32, 96], strides = [1, 1]} : vector<32x256xf32> to vector<32x96xf32>
    %cst_23 = arith.constant dense<0.000000e+00> : vector<8x96xf32>
    %49 = tpu.matmul %6, %48, %cst_23 {dimension_numbers = #tpu.dot_dimension_numbers<[1], [0], [0], [1], [0, 0, 1, 1], [], []>} : vector<8x32xf32>, vector<32x96xf32>, vector<8x96xf32> -> vector<8x96xf32>
    %50 = vector.extract_strided_slice %49 {offsets = [0, 0], sizes = [8, 32], strides = [1, 1]} : vector<8x96xf32> to vector<8x32xf32>
    %51 = vector.extract_strided_slice %49 {offsets = [0, 32], sizes = [8, 32], strides = [1, 1]} : vector<8x96xf32> to vector<8x32xf32>
    %52 = vector.extract_strided_slice %49 {offsets = [0, 64], sizes = [8, 32], strides = [1, 1]} : vector<8x96xf32> to vector<8x32xf32>
    %53 = vector.extract_strided_slice %47 {offsets = [0, 96], sizes = [32, 32], strides = [1, 1]} : vector<32x256xf32> to vector<32x32xf32>
    %54 = vector.shape_cast %50 : vector<8x32xf32> to vector<1x8x32xf32>
    %55 = vector.broadcast %54 : vector<1x8x32xf32> to vector<4x8x32xf32>
    %56 = vector.broadcast %22 : vector<4x1x32xf32> to vector<4x8x32xf32>
    %57 = arith.mulf %55, %56 : vector<4x8x32xf32>
    %58 = vector.shape_cast %57 : vector<4x8x32xf32> to vector<32x32xf32>
    %cst_24 = arith.constant dense<0.000000e+00> : vector<32x8xf32>
    %59 = tpu.matmul %58, %51, %cst_24 {dimension_numbers = #tpu.dot_dimension_numbers<[1], [1], [0], [0], [0, 0, 1, 0], [], []>} : vector<32x32xf32>, vector<8x32xf32>, vector<32x8xf32> -> vector<32x8xf32>
    %60 = arith.addf %59, %28 : vector<32x8xf32>
    %cst_25 = arith.constant dense<0xFF800000> : vector<32xf32>
    %61 = vector.multi_reduction <maximumf>, %60, %cst_25 [1] : vector<32x8xf32> to vector<32xf32>
    %cst_26 = arith.constant 0xFF800000 : f32
    %62 = vector.broadcast %cst_26 : f32 to vector<32xf32>
    %63 = arith.maximumf %62, %61 : vector<32xf32>
    %64 = vector.shape_cast %63 : vector<32xf32> to vector<32x1xf32>
    %65 = vector.broadcast %64 : vector<32x1xf32> to vector<32x8xf32>
    %66 = arith.subf %60, %65 : vector<32x8xf32>
    %67 = math.exp %66 : vector<32x8xf32>
    %cst_27 = arith.constant dense<0.000000e+00> : vector<32xf32>
    %68 = vector.multi_reduction <add>, %67, %cst_27 [1] : vector<32x8xf32> to vector<32xf32>
    %69 = vector.shape_cast %68 : vector<32xf32> to vector<32x1xf32>
    %70 = vector.broadcast %69 : vector<32x1xf32> to vector<32x8xf32>
    %71 = arith.divf %67, %70 : vector<32x8xf32>
    %cst_28 = arith.constant dense<0.000000e+00> : vector<32x32xf32>
    %72 = tpu.matmul %71, %52, %cst_28 {dimension_numbers = #tpu.dot_dimension_numbers<[1], [0], [0], [1], [0, 0, 1, 1], [], []>} : vector<32x8xf32>, vector<8x32xf32>, vector<32x32xf32> -> vector<32x32xf32>
    %73 = vector.shape_cast %72 : vector<32x32xf32> to vector<4x8x32xf32>
    %74 = vector.broadcast %22 : vector<4x1x32xf32> to vector<4x8x32xf32>
    %75 = arith.mulf %73, %74 : vector<4x8x32xf32>
    %cst_29 = arith.constant dense<0.000000e+00> : vector<8x32xf32>
    %76 = vector.multi_reduction <add>, %75, %cst_29 [0] : vector<4x8x32xf32> to vector<8x32xf32>
    %cst_30 = arith.constant dense<0.000000e+00> : vector<8x32xf32>
    %77 = tpu.matmul %76, %53, %cst_30 {dimension_numbers = #tpu.dot_dimension_numbers<[1], [0], [0], [1], [0, 0, 1, 1], [], []>} : vector<8x32xf32>, vector<32x32xf32>, vector<8x32xf32> -> vector<8x32xf32>
    %78 = vector.broadcast %37 : vector<1x32xf32> to vector<8x32xf32>
    %79 = arith.addf %77, %78 : vector<8x32xf32>
    %80 = arith.addf %79, %6 : vector<8x32xf32>
    %cst_31 = arith.constant dense<0.000000e+00> : vector<8xf32>
    %81 = vector.multi_reduction <add>, %80, %cst_31 [1] : vector<8x32xf32> to vector<8xf32>
    %82 = vector.shape_cast %81 : vector<8xf32> to vector<8x1xf32>
    %cst_32 = arith.constant 3.200000e+01 : f32
    %83 = vector.broadcast %cst_32 : f32 to vector<8x1xf32>
    %84 = arith.divf %82, %83 : vector<8x1xf32>
    %85 = vector.broadcast %84 : vector<8x1xf32> to vector<8x32xf32>
    %86 = arith.subf %80, %85 : vector<8x32xf32>
    %87 = arith.mulf %86, %86 : vector<8x32xf32>
    %cst_33 = arith.constant dense<0.000000e+00> : vector<8xf32>
    %88 = vector.multi_reduction <add>, %87, %cst_33 [1] : vector<8x32xf32> to vector<8xf32>
    %89 = vector.shape_cast %88 : vector<8xf32> to vector<8x1xf32>
    %cst_34 = arith.constant 3.200000e+01 : f32
    %90 = vector.broadcast %cst_34 : f32 to vector<8x1xf32>
    %91 = arith.divf %89, %90 : vector<8x1xf32>
    %92 = vector.broadcast %84 : vector<8x1xf32> to vector<8x32xf32>
    %93 = arith.subf %80, %92 : vector<8x32xf32>
    %cst_35 = arith.constant 9.99999974E-6 : f32
    %94 = vector.broadcast %cst_35 : f32 to vector<8x1xf32>
    %95 = arith.addf %91, %94 : vector<8x1xf32>
    %96 = math.rsqrt %95 : vector<8x1xf32>
    %97 = vector.broadcast %96 : vector<8x1xf32> to vector<8x32xf32>
    %98 = arith.mulf %93, %97 : vector<8x32xf32>
    %99 = vector.broadcast %38 : vector<1x32xf32> to vector<8x32xf32>
    %100 = arith.mulf %98, %99 : vector<8x32xf32>
    %101 = vector.broadcast %39 : vector<1x32xf32> to vector<8x32xf32>
    %102 = arith.addf %100, %101 : vector<8x32xf32>
    %103 = vector.extract_strided_slice %47 {offsets = [0, 128], sizes = [32, 32], strides = [1, 1]} : vector<32x256xf32> to vector<32x32xf32>
    %cst_36 = arith.constant dense<0.000000e+00> : vector<8x32xf32>
    %104 = tpu.matmul %102, %103, %cst_36 {dimension_numbers = #tpu.dot_dimension_numbers<[1], [0], [0], [1], [0, 0, 1, 1], [], []>} : vector<8x32xf32>, vector<32x32xf32>, vector<8x32xf32> -> vector<8x32xf32>
    %105 = vector.extract_strided_slice %47 {offsets = [0, 160], sizes = [32, 64], strides = [1, 1]} : vector<32x256xf32> to vector<32x64xf32>
    %cst_37 = arith.constant dense<0.000000e+00> : vector<8x64xf32>
    %106 = tpu.matmul %8, %105, %cst_37 {dimension_numbers = #tpu.dot_dimension_numbers<[1], [0], [0], [1], [0, 0, 1, 1], [], []>} : vector<8x32xf32>, vector<32x64xf32>, vector<8x64xf32> -> vector<8x64xf32>
    %107 = vector.extract_strided_slice %106 {offsets = [0, 0], sizes = [8, 32], strides = [1, 1]} : vector<8x64xf32> to vector<8x32xf32>
    %108 = vector.extract_strided_slice %106 {offsets = [0, 32], sizes = [8, 32], strides = [1, 1]} : vector<8x64xf32> to vector<8x32xf32>
    %109 = vector.extract_strided_slice %47 {offsets = [0, 224], sizes = [32, 32], strides = [1, 1]} : vector<32x256xf32> to vector<32x32xf32>
    %110 = vector.shape_cast %104 : vector<8x32xf32> to vector<1x8x32xf32>
    %111 = vector.broadcast %110 : vector<1x8x32xf32> to vector<4x8x32xf32>
    %112 = vector.broadcast %22 : vector<4x1x32xf32> to vector<4x8x32xf32>
    %113 = arith.mulf %111, %112 : vector<4x8x32xf32>
    %114 = vector.shape_cast %113 : vector<4x8x32xf32> to vector<32x32xf32>
    %cst_38 = arith.constant dense<0.000000e+00> : vector<32x8xf32>
    %115 = tpu.matmul %114, %107, %cst_38 {dimension_numbers = #tpu.dot_dimension_numbers<[1], [1], [0], [0], [0, 0, 1, 0], [], []>} : vector<32x32xf32>, vector<8x32xf32>, vector<32x8xf32> -> vector<32x8xf32>
    %116 = arith.addf %115, %34 : vector<32x8xf32>
    %cst_39 = arith.constant dense<0xFF800000> : vector<32xf32>
    %117 = vector.multi_reduction <maximumf>, %116, %cst_39 [1] : vector<32x8xf32> to vector<32xf32>
    %cst_40 = arith.constant 0xFF800000 : f32
    %118 = vector.broadcast %cst_40 : f32 to vector<32xf32>
    %119 = arith.maximumf %118, %117 : vector<32xf32>
    %120 = vector.shape_cast %119 : vector<32xf32> to vector<32x1xf32>
    %121 = vector.broadcast %120 : vector<32x1xf32> to vector<32x8xf32>
    %122 = arith.subf %116, %121 : vector<32x8xf32>
    %123 = math.exp %122 : vector<32x8xf32>
    %cst_41 = arith.constant dense<0.000000e+00> : vector<32xf32>
    %124 = vector.multi_reduction <add>, %123, %cst_41 [1] : vector<32x8xf32> to vector<32xf32>
    %125 = vector.shape_cast %124 : vector<32xf32> to vector<32x1xf32>
    %126 = vector.broadcast %125 : vector<32x1xf32> to vector<32x8xf32>
    %127 = arith.divf %123, %126 : vector<32x8xf32>
    %cst_42 = arith.constant dense<0.000000e+00> : vector<32x32xf32>
    %128 = tpu.matmul %127, %108, %cst_42 {dimension_numbers = #tpu.dot_dimension_numbers<[1], [0], [0], [1], [0, 0, 1, 1], [], []>} : vector<32x8xf32>, vector<8x32xf32>, vector<32x32xf32> -> vector<32x32xf32>
    %129 = vector.shape_cast %128 : vector<32x32xf32> to vector<4x8x32xf32>
    %130 = vector.broadcast %22 : vector<4x1x32xf32> to vector<4x8x32xf32>
    %131 = arith.mulf %129, %130 : vector<4x8x32xf32>
    %cst_43 = arith.constant dense<0.000000e+00> : vector<8x32xf32>
    %132 = vector.multi_reduction <add>, %131, %cst_43 [0] : vector<4x8x32xf32> to vector<8x32xf32>
    %cst_44 = arith.constant dense<0.000000e+00> : vector<8x32xf32>
    %133 = tpu.matmul %132, %109, %cst_44 {dimension_numbers = #tpu.dot_dimension_numbers<[1], [0], [0], [1], [0, 0, 1, 1], [], []>} : vector<8x32xf32>, vector<32x32xf32>, vector<8x32xf32> -> vector<8x32xf32>
    %134 = vector.broadcast %40 : vector<1x32xf32> to vector<8x32xf32>
    %135 = arith.addf %133, %134 : vector<8x32xf32>
    %136 = arith.addf %135, %102 : vector<8x32xf32>
    %cst_45 = arith.constant dense<0.000000e+00> : vector<8xf32>
    %137 = vector.multi_reduction <add>, %136, %cst_45 [1] : vector<8x32xf32> to vector<8xf32>
    %138 = vector.shape_cast %137 : vector<8xf32> to vector<8x1xf32>
    %cst_46 = arith.constant 3.200000e+01 : f32
    %139 = vector.broadcast %cst_46 : f32 to vector<8x1xf32>
    %140 = arith.divf %138, %139 : vector<8x1xf32>
    %141 = vector.broadcast %140 : vector<8x1xf32> to vector<8x32xf32>
    %142 = arith.subf %136, %141 : vector<8x32xf32>
    %143 = arith.mulf %142, %142 : vector<8x32xf32>
    %cst_47 = arith.constant dense<0.000000e+00> : vector<8xf32>
    %144 = vector.multi_reduction <add>, %143, %cst_47 [1] : vector<8x32xf32> to vector<8xf32>
    %145 = vector.shape_cast %144 : vector<8xf32> to vector<8x1xf32>
    %cst_48 = arith.constant 3.200000e+01 : f32
    %146 = vector.broadcast %cst_48 : f32 to vector<8x1xf32>
    %147 = arith.divf %145, %146 : vector<8x1xf32>
    %148 = vector.broadcast %140 : vector<8x1xf32> to vector<8x32xf32>
    %149 = arith.subf %136, %148 : vector<8x32xf32>
    %cst_49 = arith.constant 9.99999974E-6 : f32
    %150 = vector.broadcast %cst_49 : f32 to vector<8x1xf32>
    %151 = arith.addf %147, %150 : vector<8x1xf32>
    %152 = math.rsqrt %151 : vector<8x1xf32>
    %153 = vector.broadcast %152 : vector<8x1xf32> to vector<8x32xf32>
    %154 = arith.mulf %149, %153 : vector<8x32xf32>
    %155 = vector.broadcast %41 : vector<1x32xf32> to vector<8x32xf32>
    %156 = arith.mulf %154, %155 : vector<8x32xf32>
    %157 = vector.broadcast %42 : vector<1x32xf32> to vector<8x32xf32>
    %158 = arith.addf %156, %157 : vector<8x32xf32>
    %c0_50 = arith.constant 0 : index
    %c0_51 = arith.constant 0 : index
    %c0_52 = arith.constant 0 : index
    %159 = vector.load %arg9[%c0_50, %c0_51, %c0_52] : memref<2x32x64xf32, #tpu.memory_space<vmem>>, vector<1x32x64xf32>
    %160 = vector.shape_cast %159 : vector<1x32x64xf32> to vector<32x64xf32>
    %cst_53 = arith.constant dense<0.000000e+00> : vector<8x64xf32>
    %161 = tpu.matmul %158, %160, %cst_53 {dimension_numbers = #tpu.dot_dimension_numbers<[1], [0], [0], [1], [0, 0, 1, 1], [], []>} : vector<8x32xf32>, vector<32x64xf32>, vector<8x64xf32> -> vector<8x64xf32>
    %c0_54 = arith.constant 0 : index
    %c0_55 = arith.constant 0 : index
    %c0_56 = arith.constant 0 : index
    %162 = vector.load %arg10[%c0_54, %c0_55, %c0_56] : memref<2x1x64xf32, #tpu.memory_space<vmem>>, vector<1x1x64xf32>
    %163 = vector.shape_cast %162 : vector<1x1x64xf32> to vector<1x64xf32>
    %164 = vector.broadcast %163 : vector<1x64xf32> to vector<8x64xf32>
    %165 = arith.addf %161, %164 : vector<8x64xf32>
    %cst_57 = arith.constant 0.000000e+00 : f32
    %166 = vector.broadcast %cst_57 : f32 to vector<8x64xf32>
    %167 = arith.maximumf %165, %166 : vector<8x64xf32>
    %c0_58 = arith.constant 0 : index
    %c0_59 = arith.constant 0 : index
    %c0_60 = arith.constant 0 : index
    %168 = vector.load %arg11[%c0_58, %c0_59, %c0_60] : memref<2x64x32xf32, #tpu.memory_space<vmem>>, vector<1x64x32xf32>
    %169 = vector.shape_cast %168 : vector<1x64x32xf32> to vector<64x32xf32>
    %cst_61 = arith.constant dense<0.000000e+00> : vector<8x32xf32>
    %170 = tpu.matmul %167, %169, %cst_61 {dimension_numbers = #tpu.dot_dimension_numbers<[1], [0], [0], [1], [0, 0, 1, 1], [], []>} : vector<8x64xf32>, vector<64x32xf32>, vector<8x32xf32> -> vector<8x32xf32>
    %171 = vector.broadcast %45 : vector<1x32xf32> to vector<8x32xf32>
    %172 = arith.addf %170, %171 : vector<8x32xf32>
    %173 = arith.addf %172, %158 : vector<8x32xf32>
    %cst_62 = arith.constant dense<0.000000e+00> : vector<8xf32>
    %174 = vector.multi_reduction <add>, %173, %cst_62 [1] : vector<8x32xf32> to vector<8xf32>
    %175 = vector.shape_cast %174 : vector<8xf32> to vector<8x1xf32>
    %cst_63 = arith.constant 3.200000e+01 : f32
    %176 = vector.broadcast %cst_63 : f32 to vector<8x1xf32>
    %177 = arith.divf %175, %176 : vector<8x1xf32>
    %178 = vector.broadcast %177 : vector<8x1xf32> to vector<8x32xf32>
    %179 = arith.subf %173, %178 : vector<8x32xf32>
    %180 = arith.mulf %179, %179 : vector<8x32xf32>
    %cst_64 = arith.constant dense<0.000000e+00> : vector<8xf32>
    %181 = vector.multi_reduction <add>, %180, %cst_64 [1] : vector<8x32xf32> to vector<8xf32>
    %182 = vector.shape_cast %181 : vector<8xf32> to vector<8x1xf32>
    %cst_65 = arith.constant 3.200000e+01 : f32
    %183 = vector.broadcast %cst_65 : f32 to vector<8x1xf32>
    %184 = arith.divf %182, %183 : vector<8x1xf32>
    %185 = vector.broadcast %177 : vector<8x1xf32> to vector<8x32xf32>
    %186 = arith.subf %173, %185 : vector<8x32xf32>
    %cst_66 = arith.constant 9.99999974E-6 : f32
    %187 = vector.broadcast %cst_66 : f32 to vector<8x1xf32>
    %188 = arith.addf %184, %187 : vector<8x1xf32>
    %189 = math.rsqrt %188 : vector<8x1xf32>
    %190 = vector.broadcast %189 : vector<8x1xf32> to vector<8x32xf32>
    %191 = arith.mulf %186, %190 : vector<8x32xf32>
    %192 = vector.broadcast %43 : vector<1x32xf32> to vector<8x32xf32>
    %193 = arith.mulf %191, %192 : vector<8x32xf32>
    %194 = vector.broadcast %44 : vector<1x32xf32> to vector<8x32xf32>
    %195 = arith.addf %193, %194 : vector<8x32xf32>
    %c1 = arith.constant 1 : index
    %c0_67 = arith.constant 0 : index
    %c0_68 = arith.constant 0 : index
    %196 = vector.load %arg8[%c1, %c0_67, %c0_68] : memref<2x9x32xf32, #tpu.memory_space<vmem>>, vector<1x9x32xf32>
    %197 = vector.shape_cast %196 : vector<1x9x32xf32> to vector<9x32xf32>
    %198 = vector.extract_strided_slice %197 {offsets = [0, 0], sizes = [1, 32], strides = [1, 1]} : vector<9x32xf32> to vector<1x32xf32>
    %199 = vector.extract_strided_slice %197 {offsets = [1, 0], sizes = [1, 32], strides = [1, 1]} : vector<9x32xf32> to vector<1x32xf32>
    %200 = vector.extract_strided_slice %197 {offsets = [2, 0], sizes = [1, 32], strides = [1, 1]} : vector<9x32xf32> to vector<1x32xf32>
    %201 = vector.extract_strided_slice %197 {offsets = [3, 0], sizes = [1, 32], strides = [1, 1]} : vector<9x32xf32> to vector<1x32xf32>
    %202 = vector.extract_strided_slice %197 {offsets = [4, 0], sizes = [1, 32], strides = [1, 1]} : vector<9x32xf32> to vector<1x32xf32>
    %203 = vector.extract_strided_slice %197 {offsets = [5, 0], sizes = [1, 32], strides = [1, 1]} : vector<9x32xf32> to vector<1x32xf32>
    %204 = vector.extract_strided_slice %197 {offsets = [6, 0], sizes = [1, 32], strides = [1, 1]} : vector<9x32xf32> to vector<1x32xf32>
    %205 = vector.extract_strided_slice %197 {offsets = [7, 0], sizes = [1, 32], strides = [1, 1]} : vector<9x32xf32> to vector<1x32xf32>
    %206 = vector.extract_strided_slice %197 {offsets = [8, 0], sizes = [1, 32], strides = [1, 1]} : vector<9x32xf32> to vector<1x32xf32>
    %c1_69 = arith.constant 1 : index
    %c0_70 = arith.constant 0 : index
    %c0_71 = arith.constant 0 : index
    %207 = vector.load %arg7[%c1_69, %c0_70, %c0_71] : memref<2x32x256xf32, #tpu.memory_space<vmem>>, vector<1x32x256xf32>
    %208 = vector.shape_cast %207 : vector<1x32x256xf32> to vector<32x256xf32>
    %209 = vector.extract_strided_slice %208 {offsets = [0, 0], sizes = [32, 96], strides = [1, 1]} : vector<32x256xf32> to vector<32x96xf32>
    %cst_72 = arith.constant dense<0.000000e+00> : vector<8x96xf32>
    %210 = tpu.matmul %195, %209, %cst_72 {dimension_numbers = #tpu.dot_dimension_numbers<[1], [0], [0], [1], [0, 0, 1, 1], [], []>} : vector<8x32xf32>, vector<32x96xf32>, vector<8x96xf32> -> vector<8x96xf32>
    %211 = vector.extract_strided_slice %210 {offsets = [0, 0], sizes = [8, 32], strides = [1, 1]} : vector<8x96xf32> to vector<8x32xf32>
    %212 = vector.extract_strided_slice %210 {offsets = [0, 32], sizes = [8, 32], strides = [1, 1]} : vector<8x96xf32> to vector<8x32xf32>
    %213 = vector.extract_strided_slice %210 {offsets = [0, 64], sizes = [8, 32], strides = [1, 1]} : vector<8x96xf32> to vector<8x32xf32>
    %214 = vector.extract_strided_slice %208 {offsets = [0, 96], sizes = [32, 32], strides = [1, 1]} : vector<32x256xf32> to vector<32x32xf32>
    %215 = vector.shape_cast %211 : vector<8x32xf32> to vector<1x8x32xf32>
    %216 = vector.broadcast %215 : vector<1x8x32xf32> to vector<4x8x32xf32>
    %217 = vector.broadcast %22 : vector<4x1x32xf32> to vector<4x8x32xf32>
    %218 = arith.mulf %216, %217 : vector<4x8x32xf32>
    %219 = vector.shape_cast %218 : vector<4x8x32xf32> to vector<32x32xf32>
    %cst_73 = arith.constant dense<0.000000e+00> : vector<32x8xf32>
    %220 = tpu.matmul %219, %212, %cst_73 {dimension_numbers = #tpu.dot_dimension_numbers<[1], [1], [0], [0], [0, 0, 1, 0], [], []>} : vector<32x32xf32>, vector<8x32xf32>, vector<32x8xf32> -> vector<32x8xf32>
    %221 = arith.addf %220, %28 : vector<32x8xf32>
    %cst_74 = arith.constant dense<0xFF800000> : vector<32xf32>
    %222 = vector.multi_reduction <maximumf>, %221, %cst_74 [1] : vector<32x8xf32> to vector<32xf32>
    %cst_75 = arith.constant 0xFF800000 : f32
    %223 = vector.broadcast %cst_75 : f32 to vector<32xf32>
    %224 = arith.maximumf %223, %222 : vector<32xf32>
    %225 = vector.shape_cast %224 : vector<32xf32> to vector<32x1xf32>
    %226 = vector.broadcast %225 : vector<32x1xf32> to vector<32x8xf32>
    %227 = arith.subf %221, %226 : vector<32x8xf32>
    %228 = math.exp %227 : vector<32x8xf32>
    %cst_76 = arith.constant dense<0.000000e+00> : vector<32xf32>
    %229 = vector.multi_reduction <add>, %228, %cst_76 [1] : vector<32x8xf32> to vector<32xf32>
    %230 = vector.shape_cast %229 : vector<32xf32> to vector<32x1xf32>
    %231 = vector.broadcast %230 : vector<32x1xf32> to vector<32x8xf32>
    %232 = arith.divf %228, %231 : vector<32x8xf32>
    %cst_77 = arith.constant dense<0.000000e+00> : vector<32x32xf32>
    %233 = tpu.matmul %232, %213, %cst_77 {dimension_numbers = #tpu.dot_dimension_numbers<[1], [0], [0], [1], [0, 0, 1, 1], [], []>} : vector<32x8xf32>, vector<8x32xf32>, vector<32x32xf32> -> vector<32x32xf32>
    %234 = vector.shape_cast %233 : vector<32x32xf32> to vector<4x8x32xf32>
    %235 = vector.broadcast %22 : vector<4x1x32xf32> to vector<4x8x32xf32>
    %236 = arith.mulf %234, %235 : vector<4x8x32xf32>
    %cst_78 = arith.constant dense<0.000000e+00> : vector<8x32xf32>
    %237 = vector.multi_reduction <add>, %236, %cst_78 [0] : vector<4x8x32xf32> to vector<8x32xf32>
    %cst_79 = arith.constant dense<0.000000e+00> : vector<8x32xf32>
    %238 = tpu.matmul %237, %214, %cst_79 {dimension_numbers = #tpu.dot_dimension_numbers<[1], [0], [0], [1], [0, 0, 1, 1], [], []>} : vector<8x32xf32>, vector<32x32xf32>, vector<8x32xf32> -> vector<8x32xf32>
    %239 = vector.broadcast %198 : vector<1x32xf32> to vector<8x32xf32>
    %240 = arith.addf %238, %239 : vector<8x32xf32>
    %241 = arith.addf %240, %195 : vector<8x32xf32>
    %cst_80 = arith.constant dense<0.000000e+00> : vector<8xf32>
    %242 = vector.multi_reduction <add>, %241, %cst_80 [1] : vector<8x32xf32> to vector<8xf32>
    %243 = vector.shape_cast %242 : vector<8xf32> to vector<8x1xf32>
    %cst_81 = arith.constant 3.200000e+01 : f32
    %244 = vector.broadcast %cst_81 : f32 to vector<8x1xf32>
    %245 = arith.divf %243, %244 : vector<8x1xf32>
    %246 = vector.broadcast %245 : vector<8x1xf32> to vector<8x32xf32>
    %247 = arith.subf %241, %246 : vector<8x32xf32>
    %248 = arith.mulf %247, %247 : vector<8x32xf32>
    %cst_82 = arith.constant dense<0.000000e+00> : vector<8xf32>
    %249 = vector.multi_reduction <add>, %248, %cst_82 [1] : vector<8x32xf32> to vector<8xf32>
    %250 = vector.shape_cast %249 : vector<8xf32> to vector<8x1xf32>
    %cst_83 = arith.constant 3.200000e+01 : f32
    %251 = vector.broadcast %cst_83 : f32 to vector<8x1xf32>
    %252 = arith.divf %250, %251 : vector<8x1xf32>
    %253 = vector.broadcast %245 : vector<8x1xf32> to vector<8x32xf32>
    %254 = arith.subf %241, %253 : vector<8x32xf32>
    %cst_84 = arith.constant 9.99999974E-6 : f32
    %255 = vector.broadcast %cst_84 : f32 to vector<8x1xf32>
    %256 = arith.addf %252, %255 : vector<8x1xf32>
    %257 = math.rsqrt %256 : vector<8x1xf32>
    %258 = vector.broadcast %257 : vector<8x1xf32> to vector<8x32xf32>
    %259 = arith.mulf %254, %258 : vector<8x32xf32>
    %260 = vector.broadcast %199 : vector<1x32xf32> to vector<8x32xf32>
    %261 = arith.mulf %259, %260 : vector<8x32xf32>
    %262 = vector.broadcast %200 : vector<1x32xf32> to vector<8x32xf32>
    %263 = arith.addf %261, %262 : vector<8x32xf32>
    %264 = vector.extract_strided_slice %208 {offsets = [0, 128], sizes = [32, 32], strides = [1, 1]} : vector<32x256xf32> to vector<32x32xf32>
    %cst_85 = arith.constant dense<0.000000e+00> : vector<8x32xf32>
    %265 = tpu.matmul %263, %264, %cst_85 {dimension_numbers = #tpu.dot_dimension_numbers<[1], [0], [0], [1], [0, 0, 1, 1], [], []>} : vector<8x32xf32>, vector<32x32xf32>, vector<8x32xf32> -> vector<8x32xf32>
    %266 = vector.extract_strided_slice %208 {offsets = [0, 160], sizes = [32, 64], strides = [1, 1]} : vector<32x256xf32> to vector<32x64xf32>
    %cst_86 = arith.constant dense<0.000000e+00> : vector<8x64xf32>
    %267 = tpu.matmul %8, %266, %cst_86 {dimension_numbers = #tpu.dot_dimension_numbers<[1], [0], [0], [1], [0, 0, 1, 1], [], []>} : vector<8x32xf32>, vector<32x64xf32>, vector<8x64xf32> -> vector<8x64xf32>
    %268 = vector.extract_strided_slice %267 {offsets = [0, 0], sizes = [8, 32], strides = [1, 1]} : vector<8x64xf32> to vector<8x32xf32>
    %269 = vector.extract_strided_slice %267 {offsets = [0, 32], sizes = [8, 32], strides = [1, 1]} : vector<8x64xf32> to vector<8x32xf32>
    %270 = vector.extract_strided_slice %208 {offsets = [0, 224], sizes = [32, 32], strides = [1, 1]} : vector<32x256xf32> to vector<32x32xf32>
    %271 = vector.shape_cast %265 : vector<8x32xf32> to vector<1x8x32xf32>
    %272 = vector.broadcast %271 : vector<1x8x32xf32> to vector<4x8x32xf32>
    %273 = vector.broadcast %22 : vector<4x1x32xf32> to vector<4x8x32xf32>
    %274 = arith.mulf %272, %273 : vector<4x8x32xf32>
    %275 = vector.shape_cast %274 : vector<4x8x32xf32> to vector<32x32xf32>
    %cst_87 = arith.constant dense<0.000000e+00> : vector<32x8xf32>
    %276 = tpu.matmul %275, %268, %cst_87 {dimension_numbers = #tpu.dot_dimension_numbers<[1], [1], [0], [0], [0, 0, 1, 0], [], []>} : vector<32x32xf32>, vector<8x32xf32>, vector<32x8xf32> -> vector<32x8xf32>
    %277 = arith.addf %276, %34 : vector<32x8xf32>
    %cst_88 = arith.constant dense<0xFF800000> : vector<32xf32>
    %278 = vector.multi_reduction <maximumf>, %277, %cst_88 [1] : vector<32x8xf32> to vector<32xf32>
    %cst_89 = arith.constant 0xFF800000 : f32
    %279 = vector.broadcast %cst_89 : f32 to vector<32xf32>
    %280 = arith.maximumf %279, %278 : vector<32xf32>
    %281 = vector.shape_cast %280 : vector<32xf32> to vector<32x1xf32>
    %282 = vector.broadcast %281 : vector<32x1xf32> to vector<32x8xf32>
    %283 = arith.subf %277, %282 : vector<32x8xf32>
    %284 = math.exp %283 : vector<32x8xf32>
    %cst_90 = arith.constant dense<0.000000e+00> : vector<32xf32>
    %285 = vector.multi_reduction <add>, %284, %cst_90 [1] : vector<32x8xf32> to vector<32xf32>
    %286 = vector.shape_cast %285 : vector<32xf32> to vector<32x1xf32>
    %287 = vector.broadcast %286 : vector<32x1xf32> to vector<32x8xf32>
    %288 = arith.divf %284, %287 : vector<32x8xf32>
    %cst_91 = arith.constant dense<0.000000e+00> : vector<32x32xf32>
    %289 = tpu.matmul %288, %269, %cst_91 {dimension_numbers = #tpu.dot_dimension_numbers<[1], [0], [0], [1], [0, 0, 1, 1], [], []>} : vector<32x8xf32>, vector<8x32xf32>, vector<32x32xf32> -> vector<32x32xf32>
    %290 = vector.shape_cast %289 : vector<32x32xf32> to vector<4x8x32xf32>
    %291 = vector.broadcast %22 : vector<4x1x32xf32> to vector<4x8x32xf32>
    %292 = arith.mulf %290, %291 : vector<4x8x32xf32>
    %cst_92 = arith.constant dense<0.000000e+00> : vector<8x32xf32>
    %293 = vector.multi_reduction <add>, %292, %cst_92 [0] : vector<4x8x32xf32> to vector<8x32xf32>
    %cst_93 = arith.constant dense<0.000000e+00> : vector<8x32xf32>
    %294 = tpu.matmul %293, %270, %cst_93 {dimension_numbers = #tpu.dot_dimension_numbers<[1], [0], [0], [1], [0, 0, 1, 1], [], []>} : vector<8x32xf32>, vector<32x32xf32>, vector<8x32xf32> -> vector<8x32xf32>
    %295 = vector.broadcast %201 : vector<1x32xf32> to vector<8x32xf32>
    %296 = arith.addf %294, %295 : vector<8x32xf32>
    %297 = arith.addf %296, %263 : vector<8x32xf32>
    %cst_94 = arith.constant dense<0.000000e+00> : vector<8xf32>
    %298 = vector.multi_reduction <add>, %297, %cst_94 [1] : vector<8x32xf32> to vector<8xf32>
    %299 = vector.shape_cast %298 : vector<8xf32> to vector<8x1xf32>
    %cst_95 = arith.constant 3.200000e+01 : f32
    %300 = vector.broadcast %cst_95 : f32 to vector<8x1xf32>
    %301 = arith.divf %299, %300 : vector<8x1xf32>
    %302 = vector.broadcast %301 : vector<8x1xf32> to vector<8x32xf32>
    %303 = arith.subf %297, %302 : vector<8x32xf32>
    %304 = arith.mulf %303, %303 : vector<8x32xf32>
    %cst_96 = arith.constant dense<0.000000e+00> : vector<8xf32>
    %305 = vector.multi_reduction <add>, %304, %cst_96 [1] : vector<8x32xf32> to vector<8xf32>
    %306 = vector.shape_cast %305 : vector<8xf32> to vector<8x1xf32>
    %cst_97 = arith.constant 3.200000e+01 : f32
    %307 = vector.broadcast %cst_97 : f32 to vector<8x1xf32>
    %308 = arith.divf %306, %307 : vector<8x1xf32>
    %309 = vector.broadcast %301 : vector<8x1xf32> to vector<8x32xf32>
    %310 = arith.subf %297, %309 : vector<8x32xf32>
    %cst_98 = arith.constant 9.99999974E-6 : f32
    %311 = vector.broadcast %cst_98 : f32 to vector<8x1xf32>
    %312 = arith.addf %308, %311 : vector<8x1xf32>
    %313 = math.rsqrt %312 : vector<8x1xf32>
    %314 = vector.broadcast %313 : vector<8x1xf32> to vector<8x32xf32>
    %315 = arith.mulf %310, %314 : vector<8x32xf32>
    %316 = vector.broadcast %202 : vector<1x32xf32> to vector<8x32xf32>
    %317 = arith.mulf %315, %316 : vector<8x32xf32>
    %318 = vector.broadcast %203 : vector<1x32xf32> to vector<8x32xf32>
    %319 = arith.addf %317, %318 : vector<8x32xf32>
    %c1_99 = arith.constant 1 : index
    %c0_100 = arith.constant 0 : index
    %c0_101 = arith.constant 0 : index
    %320 = vector.load %arg9[%c1_99, %c0_100, %c0_101] : memref<2x32x64xf32, #tpu.memory_space<vmem>>, vector<1x32x64xf32>
    %321 = vector.shape_cast %320 : vector<1x32x64xf32> to vector<32x64xf32>
    %cst_102 = arith.constant dense<0.000000e+00> : vector<8x64xf32>
    %322 = tpu.matmul %319, %321, %cst_102 {dimension_numbers = #tpu.dot_dimension_numbers<[1], [0], [0], [1], [0, 0, 1, 1], [], []>} : vector<8x32xf32>, vector<32x64xf32>, vector<8x64xf32> -> vector<8x64xf32>
    %c1_103 = arith.constant 1 : index
    %c0_104 = arith.constant 0 : index
    %c0_105 = arith.constant 0 : index
    %323 = vector.load %arg10[%c1_103, %c0_104, %c0_105] : memref<2x1x64xf32, #tpu.memory_space<vmem>>, vector<1x1x64xf32>
    %324 = vector.shape_cast %323 : vector<1x1x64xf32> to vector<1x64xf32>
    %325 = vector.broadcast %324 : vector<1x64xf32> to vector<8x64xf32>
    %326 = arith.addf %322, %325 : vector<8x64xf32>
    %cst_106 = arith.constant 0.000000e+00 : f32
    %327 = vector.broadcast %cst_106 : f32 to vector<8x64xf32>
    %328 = arith.maximumf %326, %327 : vector<8x64xf32>
    %c1_107 = arith.constant 1 : index
    %c0_108 = arith.constant 0 : index
    %c0_109 = arith.constant 0 : index
    %329 = vector.load %arg11[%c1_107, %c0_108, %c0_109] : memref<2x64x32xf32, #tpu.memory_space<vmem>>, vector<1x64x32xf32>
    %330 = vector.shape_cast %329 : vector<1x64x32xf32> to vector<64x32xf32>
    %cst_110 = arith.constant dense<0.000000e+00> : vector<8x32xf32>
    %331 = tpu.matmul %328, %330, %cst_110 {dimension_numbers = #tpu.dot_dimension_numbers<[1], [0], [0], [1], [0, 0, 1, 1], [], []>} : vector<8x64xf32>, vector<64x32xf32>, vector<8x32xf32> -> vector<8x32xf32>
    %332 = vector.broadcast %206 : vector<1x32xf32> to vector<8x32xf32>
    %333 = arith.addf %331, %332 : vector<8x32xf32>
    %334 = arith.addf %333, %319 : vector<8x32xf32>
    %cst_111 = arith.constant dense<0.000000e+00> : vector<8xf32>
    %335 = vector.multi_reduction <add>, %334, %cst_111 [1] : vector<8x32xf32> to vector<8xf32>
    %336 = vector.shape_cast %335 : vector<8xf32> to vector<8x1xf32>
    %cst_112 = arith.constant 3.200000e+01 : f32
    %337 = vector.broadcast %cst_112 : f32 to vector<8x1xf32>
    %338 = arith.divf %336, %337 : vector<8x1xf32>
    %339 = vector.broadcast %338 : vector<8x1xf32> to vector<8x32xf32>
    %340 = arith.subf %334, %339 : vector<8x32xf32>
    %341 = arith.mulf %340, %340 : vector<8x32xf32>
    %cst_113 = arith.constant dense<0.000000e+00> : vector<8xf32>
    %342 = vector.multi_reduction <add>, %341, %cst_113 [1] : vector<8x32xf32> to vector<8xf32>
    %343 = vector.shape_cast %342 : vector<8xf32> to vector<8x1xf32>
    %cst_114 = arith.constant 3.200000e+01 : f32
    %344 = vector.broadcast %cst_114 : f32 to vector<8x1xf32>
    %345 = arith.divf %343, %344 : vector<8x1xf32>
    %346 = vector.broadcast %338 : vector<8x1xf32> to vector<8x32xf32>
    %347 = arith.subf %334, %346 : vector<8x32xf32>
    %cst_115 = arith.constant 9.99999974E-6 : f32
    %348 = vector.broadcast %cst_115 : f32 to vector<8x1xf32>
    %349 = arith.addf %345, %348 : vector<8x1xf32>
    %350 = math.rsqrt %349 : vector<8x1xf32>
    %351 = vector.broadcast %350 : vector<8x1xf32> to vector<8x32xf32>
    %352 = arith.mulf %347, %351 : vector<8x32xf32>
    %353 = vector.broadcast %204 : vector<1x32xf32> to vector<8x32xf32>
    %354 = arith.mulf %352, %353 : vector<8x32xf32>
    %355 = vector.broadcast %205 : vector<1x32xf32> to vector<8x32xf32>
    %356 = arith.addf %354, %355 : vector<8x32xf32>
    %c0_116 = arith.constant 0 : index
    %c0_117 = arith.constant 0 : index
    %357 = vector.load %arg12[%c0_116, %c0_117] : memref<32x128xf32, #tpu.memory_space<vmem>>, vector<32x128xf32>
    %cst_118 = arith.constant dense<0.000000e+00> : vector<8x128xf32>
    %358 = tpu.matmul %356, %357, %cst_118 {dimension_numbers = #tpu.dot_dimension_numbers<[1], [0], [0], [1], [0, 0, 1, 1], [], []>} : vector<8x32xf32>, vector<32x128xf32>, vector<8x128xf32> -> vector<8x128xf32>
    %c0_119 = arith.constant 0 : index
    %c0_120 = arith.constant 0 : index
    %359 = vector.load %arg13[%c0_119, %c0_120] : memref<1x128xf32, #tpu.memory_space<vmem>>, vector<1x128xf32>
    %360 = vector.broadcast %359 : vector<1x128xf32> to vector<8x128xf32>
    %361 = arith.addf %358, %360 : vector<8x128xf32>
    %362 = tpu.iota {dimensions = array<i32: 1>} : vector<1x128xi32>
    %c64_i32 = arith.constant 64 : i32
    %363 = vector.broadcast %c64_i32 : i32 to vector<1x128xi32>
    %364 = arith.cmpi slt, %362, %363 : vector<1x128xi32>
    %cst_121 = arith.constant 0xFF800000 : f32
    %365 = vector.shape_cast %364 : vector<1x128xi1> to vector<1x128xi1>
    %366 = vector.broadcast %365 : vector<1x128xi1> to vector<8x128xi1>
    %367 = vector.broadcast %cst_121 : f32 to vector<8x128xf32>
    %368 = arith.select %366, %361, %367 : vector<8x128xi1>, vector<8x128xf32>
    %cst_122 = arith.constant dense<0xFF800000> : vector<8xf32>
    %369 = vector.multi_reduction <maximumf>, %368, %cst_122 [1] : vector<8x128xf32> to vector<8xf32>
    %370 = vector.shape_cast %369 : vector<8xf32> to vector<8x1xf32>
    %cst_123 = arith.constant 0xFF800000 : f32
    %371 = vector.shape_cast %364 : vector<1x128xi1> to vector<1x128xi1>
    %372 = vector.broadcast %371 : vector<1x128xi1> to vector<8x128xi1>
    %373 = vector.broadcast %cst_123 : f32 to vector<8x128xf32>
    %374 = arith.select %372, %373, %361 : vector<8x128xi1>, vector<8x128xf32>
    %cst_124 = arith.constant dense<0xFF800000> : vector<8xf32>
    %375 = vector.multi_reduction <maximumf>, %374, %cst_124 [1] : vector<8x128xf32> to vector<8xf32>
    %376 = vector.shape_cast %375 : vector<8xf32> to vector<8x1xf32>
    %377 = vector.shape_cast %364 : vector<1x128xi1> to vector<1x128xi1>
    %378 = vector.broadcast %377 : vector<1x128xi1> to vector<8x128xi1>
    %379 = vector.shape_cast %370 : vector<8x1xf32> to vector<8x1xf32>
    %380 = vector.broadcast %379 : vector<8x1xf32> to vector<8x128xf32>
    %381 = vector.shape_cast %376 : vector<8x1xf32> to vector<8x1xf32>
    %382 = vector.broadcast %381 : vector<8x1xf32> to vector<8x128xf32>
    %383 = arith.select %378, %380, %382 : vector<8x128xi1>, vector<8x128xf32>
    %384 = arith.subf %361, %383 : vector<8x128xf32>
    %385 = math.exp %384 : vector<8x128xf32>
    %cst_125 = arith.constant 0.000000e+00 : f32
    %386 = vector.shape_cast %364 : vector<1x128xi1> to vector<1x128xi1>
    %387 = vector.broadcast %386 : vector<1x128xi1> to vector<8x128xi1>
    %388 = vector.broadcast %cst_125 : f32 to vector<8x128xf32>
    %389 = arith.select %387, %385, %388 : vector<8x128xi1>, vector<8x128xf32>
    %cst_126 = arith.constant dense<0.000000e+00> : vector<8xf32>
    %390 = vector.multi_reduction <add>, %389, %cst_126 [1] : vector<8x128xf32> to vector<8xf32>
    %391 = vector.shape_cast %390 : vector<8xf32> to vector<8x1xf32>
    %cst_127 = arith.constant 0.000000e+00 : f32
    %392 = vector.shape_cast %364 : vector<1x128xi1> to vector<1x128xi1>
    %393 = vector.broadcast %392 : vector<1x128xi1> to vector<8x128xi1>
    %394 = vector.broadcast %cst_127 : f32 to vector<8x128xf32>
    %395 = arith.select %393, %394, %385 : vector<8x128xi1>, vector<8x128xf32>
    %cst_128 = arith.constant dense<0.000000e+00> : vector<8xf32>
    %396 = vector.multi_reduction <add>, %395, %cst_128 [1] : vector<8x128xf32> to vector<8xf32>
    %397 = vector.shape_cast %396 : vector<8xf32> to vector<8x1xf32>
    %398 = vector.shape_cast %364 : vector<1x128xi1> to vector<1x128xi1>
    %399 = vector.broadcast %398 : vector<1x128xi1> to vector<8x128xi1>
    %400 = vector.shape_cast %391 : vector<8x1xf32> to vector<8x1xf32>
    %401 = vector.broadcast %400 : vector<8x1xf32> to vector<8x128xf32>
    %402 = vector.shape_cast %397 : vector<8x1xf32> to vector<8x1xf32>
    %403 = vector.broadcast %402 : vector<8x1xf32> to vector<8x128xf32>
    %404 = arith.select %399, %401, %403 : vector<8x128xi1>, vector<8x128xf32>
    %405 = arith.divf %385, %404 : vector<8x128xf32>
    %c0_129 = arith.constant 0 : index
    %c0_130 = arith.constant 0 : index
    %c0_131 = arith.constant 0 : index
    %406 = vector.load %arg14[%c0_129, %c0_130, %c0_131] : memref<1x8x128xf32, #tpu.memory_space<vmem>>, vector<1x8x128xf32>
    %407 = vector.shape_cast %406 : vector<1x8x128xf32> to vector<8x128xf32>
    %408 = vector.shape_cast %405 : vector<8x128xf32> to vector<1x8x128xf32>
    tpu.vector_store %arg14[%c0_129, %c0_130, %c0_131], %408 {strides = array<i32>} : memref<1x8x128xf32, #tpu.memory_space<vmem>>, vector<1x8x128xf32>,
    return
  }
  func.func @transform_0(%arg0: i32) -> (i32, i32, i32) {
    %c0_i32 = arith.constant 0 : i32
    %c0_i32_0 = arith.constant 0 : i32
    %c0_i32_1 = arith.constant 0 : i32
    return %arg0, %c0_i32, %c0_i32_0 : i32, i32, i32
  }
  func.func @transform_1(%arg0: i32) -> (i32, i32, i32) {
    %c0_i32 = arith.constant 0 : i32
    %c0_i32_0 = arith.constant 0 : i32
    %c0_i32_1 = arith.constant 0 : i32
    %c0_i32_2 = arith.constant 0 : i32
    return %c0_i32, %c0_i32_0, %c0_i32_1 : i32, i32, i32
  }
  func.func @transform_2(%arg0: i32) -> (i32, i32, i32) {
    %c0_i32 = arith.constant 0 : i32
    %c0_i32_0 = arith.constant 0 : i32
    %c0_i32_1 = arith.constant 0 : i32
    return %arg0, %c0_i32, %c0_i32_0 : i32, i32, i32
  }
  func.func @transform_3(%arg0: i32) -> (i32, i32, i32) {
    %c0_i32 = arith.constant 0 : i32
    %c0_i32_0 = arith.constant 0 : i32
    %c0_i32_1 = arith.constant 0 : i32
    return %arg0, %c0_i32, %c0_i32_0 : i32, i32, i32
  }
  func.func @transform_4(%arg0: i32) -> (i32, i32, i32) {
    %c0_i32 = arith.constant 0 : i32
    %c0_i32_0 = arith.constant 0 : i32
    %c0_i32_1 = arith.constant 0 : i32
    return %arg0, %c0_i32, %c0_i32_0 : i32, i32, i32
  }
  func.func @transform_5(%arg0: i32) -> (i32, i32) {
    %c0_i32 = arith.constant 0 : i32
    %c0_i32_0 = arith.constant 0 : i32
    %c0_i32_1 = arith.constant 0 : i32
    return %c0_i32, %c0_i32_0 : i32, i32
  }
  func.func @transform_6(%arg0: i32) -> (i32, i32, i32) {
    %c0_i32 = arith.constant 0 : i32
    %c0_i32_0 = arith.constant 0 : i32
    %c0_i32_1 = arith.constant 0 : i32
    %c0_i32_2 = arith.constant 0 : i32
    return %c0_i32, %c0_i32_0, %c0_i32_1 : i32, i32, i32
  }
  func.func @transform_7(%arg0: i32) -> (i32, i32, i32) {
    %c0_i32 = arith.constant 0 : i32
    %c0_i32_0 = arith.constant 0 : i32
    %c0_i32_1 = arith.constant 0 : i32
    %c0_i32_2 = arith.constant 0 : i32
    return %c0_i32, %c0_i32_0, %c0_i32_1 : i32, i32, i32
  }
  func.func @transform_8(%arg0: i32) -> (i32, i32, i32) {
    %c0_i32 = arith.constant 0 : i32
    %c0_i32_0 = arith.constant 0 : i32
    %c0_i32_1 = arith.constant 0 : i32
    %c0_i32_2 = arith.constant 0 : i32
    return %c0_i32, %c0_i32_0, %c0_i32_1 : i32, i32, i32
  }
  func.func @transform_9(%arg0: i32) -> (i32, i32, i32) {
    %c0_i32 = arith.constant 0 : i32
    %c0_i32_0 = arith.constant 0 : i32
    %c0_i32_1 = arith.constant 0 : i32
    %c0_i32_2 = arith.constant 0 : i32
    return %c0_i32, %c0_i32_0, %c0_i32_1 : i32, i32, i32
  }
  func.func @transform_10(%arg0: i32) -> (i32, i32, i32) {
    %c0_i32 = arith.constant 0 : i32
    %c0_i32_0 = arith.constant 0 : i32
    %c0_i32_1 = arith.constant 0 : i32
    %c0_i32_2 = arith.constant 0 : i32
    return %c0_i32, %c0_i32_0, %c0_i32_1 : i32, i32, i32
  }
  func.func @transform_11(%arg0: i32) -> (i32, i32) {
    %c0_i32 = arith.constant 0 : i32
    %c0_i32_0 = arith.constant 0 : i32
    %c0_i32_1 = arith.constant 0 : i32
    return %c0_i32, %c0_i32_0 : i32, i32
  }
  func.func @transform_12(%arg0: i32) -> (i32, i32) {
    %c0_i32 = arith.constant 0 : i32
    %c0_i32_0 = arith.constant 0 : i32
    %c0_i32_1 = arith.constant 0 : i32
    return %c0_i32, %c0_i32_0 : i32, i32
  }
  func.func @transform_13(%arg0: i32) -> (i32, i32, i32) {
    %c0_i32 = arith.constant 0 : i32
    %c0_i32_0 = arith.constant 0 : i32
    %c0_i32_1 = arith.constant 0 : i32
    return %arg0, %c0_i32, %c0_i32_0 : i32, i32, i32
  }
}

</mosaic_0001>

<bundles_post_ra>
// kernel: decoder_forward.1
= control target key start
LH: loop header
LB: loop body
LE: loop exit
PB: predicated region body
PF: predicated region fallthrough
CT: control target
= control target key end

     0   :  { %s4053_s25 = smov 0   ;;  %s4696_s0 = inlined_call_operand.vmem [shape: f32[2,8,64], index: 0, kind: input, shape index: {}]   ;;  %s4697_s1 = inlined_call_operand.vmem [shape: f32[1,8,32], index: 1, kind: input, shape index: {}]   ;;  %s4698_s2 = inlined_call_operand.vmem [shape: f32[2,8,32], index: 2, kind: input, shape index: {}]   ;;  %s4699_s3 = inlined_call_operand.vmem [shape: f32[2,8,8], index: 3, kind: input, shape index: {}]   ;;  %s4700_s4 = inlined_call_operand.vmem [shape: f32[2,8,8], index: 4, kind: input, shape index: {}]   ;;  %s4701_s5 = inlined_call_operand.vmem [shape: f32[64,32], index: 5, kind: input, shape index: {}]   ;;  %s4702_s6 = inlined_call_operand.vmem [shape: f32[2,32,256], index: 6, kind: input, shape index: {}]   ;;  %s4703_s7 = inlined_call_operand.vmem [shape: f32[2,9,32], index: 7, kind: input, shape index: {}]   ;;  %s4704_s8 = inlined_call_operand.vmem [shape: f32[2,32,64], index: 8, kind: input, shape index: {}]   ;;  %s4705_s9 = inlined_call_operand.vmem [shape: f32[2,1,64], index: 9, kind: input, shape index: {}]   ;;  %s4706_s10 = inlined_call_operand.vmem [shape: f32[2,64,32], index: 10, kind: input, shape index: {}]   ;;  %s4707_s11 = inlined_call_operand.vmem [shape: f32[32,128], index: 11, kind: input, shape index: {}]   ;;  %s4708_s12 = inlined_call_operand.vmem [shape: f32[1,128], index: 12, kind: input, shape index: {}]   ;;  %s4709_s13 = inlined_call_operand.vmem [shape: f32[2,8,128], index: 13, kind: output, shape index: {}]  }
   0x1 LB: > { %s3210_s26 = sadd.s32 4294967295, %s3974_s25   ;;  %p3214_p0 = scmp.ge.s32.totalorder %s3974_s25, 1  ;;  %s3974_s25 = sphi %s4053_s25, %s23_s25  }
   0x2   : > { %p413_p1 = scmp.lt.s32.totalorder %s3974_s25, 3 }
   0x4   : > { %p414_p2 = pnand %p3214_p0, %p413_p1 }
   0x5   : > { %v488_v0 = vld [vmem:[%s4701_s5] sm:$0xff] (!%p414_p2)  ;;  %v489_v1 = vld [vmem:[%s4701_s5 + $0x8] sm:$0xff] (!%p414_p2)  ;;  %v490_v2 = vld [vmem:[%s4701_s5 + $0x10] sm:$0xff] (!%p414_p2)  ;;  %v3976_v3 = vmov (!%p414_p2), 0.0|0.0   ;;  %vm3977_vm0 = vmmov (!%p414_p2), 0   ;;  %v3978_v6 = vmov (!%p414_p2), 0.0   ;;  %v572_v26 = vlaneseq (!%p414_p2) }
   0x6   : > { %417 = sbr.rel (%p414_p2) target bundleno = 8499 (0x2133), region = 72  ;;  %3699 = vmatprep.subr.bf16.mxu0 (!%p414_p2), %v3976_v3  ;;  %v3700_v4 = vpack.c.bf16 (!%p414_p2), %v489_v1, %v488_v0  ;;  %v491_v5 = vld [vmem:[%s4701_s5 + $0x18] sm:$0xff] (!%p414_p2)  ;;  %3451 = vmatprep.mubr.msk.f32.mxu0 (!%p414_p2), %vm3977_vm0, %v3978_v6  ;;  %p467_p3 = scmp.lt.s32.totalorder (!%p414_p2), %s3210_s26, 1  ;;  %v4080_v7 = vld [vmem:[%s4702_s6] sm:$0xff] (!%p414_p2)  ;;  %v4087_v9 = vld [vmem:[%s4702_s6 + $0x10] sm:$0xff] (!%p414_p2)  ;;  %vm497_vm1 = vcmask (!%p414_p2), 523264  }
   0x7   : > { %3711 = vmatprep.subr.bf16.mxu1 (!%p414_p2), %v3976_v3  ;;  %3462 = vmatprep.mubr.msk.f32.mxu1 (!%p414_p2), %vm3977_vm0, %v3978_v6  ;;  %v3703_v8 = vpack.c.bf16 (!%p414_p2), %v491_v5, %v490_v2  ;;  %v492_v10 = vld [vmem:[%s4701_s5 + $0x20] sm:$0xff] (!%p414_p2)  ;;  %v493_v11 = vld [vmem:[%s4701_s5 + $0x28] sm:$0xff] (!%p414_p2)  ;;  %v3828_v12 = vpack.i.bf16 (!%p414_p2), %v4087_v9, %v4080_v7  ;;  %v3712_v13 = vpack.c.bf16 (!%p414_p2), %v4087_v9, %v4080_v7  ;;  %v494_v15 = vld [vmem:[%s4701_s5 + $0x30] sm:$0xff] (!%p414_p2)  ;;  %vm621_vm2 = vcmask (!%p414_p2), 261120   ;;  %s3980_s24 = smov (!%p414_p2), 96   ;;  %s3981_s30 = smov (!%p414_p2), 64  }
   0x8   : > { %3701 = vmatpush3.bf16.msra.mxu0 (!%p414_p2), %v3700_v4  ;;  %v3706_v14 = vpack.c.bf16 (!%p414_p2), %v493_v11, %v492_v10  ;;  %v495_v16 = vld [vmem:[%s4701_s5 + $0x38] sm:$0xff] (!%p414_p2)  ;;  %v4119_v19 = vld [vmem:[%s4702_s6 + $0x20] sm:$0xff] (!%p414_p2)  ;;  %v4124_v20 = vld [vmem:[%s4702_s6 + $0x30] sm:$0xff] (!%p414_p2)  ;;  %v4135_v27 = vshrl.u32 (!%p414_p2), %v572_v26, 7  ;;  %v4138_v29 = vand.u32 (!%p414_p2), 127, %v572_v26  ;;  %vm821_vm6 = vcmask (!%p414_p2), 64512  }
   0x9   : > { %3702 = vmatprep.subr.bf16.mxu0 (!%p414_p2), %v3976_v3  ;;  %3713 = vmatpush3.bf16.msra.mxu1 (!%p414_p2), %v3712_v13  ;;  %v3709_v17 = vpack.c.bf16 (!%p414_p2), %v495_v16, %v494_v15  ;;  %v3715_v21 = vpack.c.bf16 (!%p414_p2), %v4124_v20, %v4119_v19  ;;  %v496_v22 = vld [vmem:[%s4697_s1] sm:$0xff] (!%p414_p2)  ;;  %v3979_v32 = vmov (!%p414_p2), 1966171168   ;;  %s3982_s14 = smov (!%p414_p2), 32  }
   0xa   : > { %3714 = vmatprep.subr.bf16.mxu1 (!%p414_p2), %v3976_v3  ;;  %v578_v28 = vadd.s32 (!%p414_p2), 1, %v4135_v27  ;;  %v576_v30 = vmul.u32 (!%p414_p2), 8, %v4135_v27  ;;  %v586_v33 = vunpack.c.l.s4 (!%p414_p2), %v3979_v32  ;;  %v4146_v38 = vsub.s32 (!%p414_p2), 0, %v4135_v27 }
   0xb   : > { %vm3098_vm7 = vcmp.lt.s32.totalorder (!%p414_p2), %v4138_v29, 64 }
   0xc   : > { %3704 = vmatpush3.bf16.msra.mxu0 (!%p414_p2), %v3703_v8  ;;  %v579_v31 = vmul.u32 (!%p414_p2), 8, %v578_v28  ;;  %vm577_vm3 = vcmp.ge.s32.totalorder (!%p414_p2), %v4138_v29, %v576_v30  ;;  %v587_v34 = vunpack.c.0.s8 (!%p414_p2), %v586_v33 }
   0xd   : > { %s4711_s26 = smov (!%p467_p3, %s3210_s26), 1  ;;  %3705 = vmatprep.subr.bf16.mxu0 %v3976_v3  ;;  %3716 = vmatpush3.bf16.msra.mxu1 %v3715_v21 }
   0xe   : > { %s4108_s15 = sshll.u32 %s4711_s26, 3  ;;  %vm580_vm4 = vcmp.lt.s32.totalorder %v4138_v29, %v579_v31  ;;  %v590_v35 = vsub.s32 %v587_v34, %v4135_v27  ;;  %v3833_v34 = vpack.i.bf16 %v4124_v20, %v4119_v19 }
   0xf   : > { %s470_s18 = scalar_lea.vmem %s4696_s0, %s4108_s15  ;;  %vm581_vm5 = vmand %vm577_vm3, %vm580_vm4  ;;  %s478_s29 = scalar_lea.vmem %s4699_s3, %s4108_s15 }
  0x10   : > { %3707 = vmatpush3.bf16.msra.mxu0 %v3706_v14  ;;  %v487_v18 = vld [vmem:[%s470_s18] sm:$0xff]  ;;  %v3221_v36 = vsel %vm581_vm5, 1.0, %v3978_v6  ;;  %s474_s16 = scalar_lea.vmem %s4698_s2, %s4108_s15  ;;  %s482_s19 = scalar_lea.vmem %s4700_s4, %s4108_s15 }
  0x11   : > { %3708 = vmatprep.subr.bf16.mxu0 %v3976_v3  ;;  %v591_v37 = vrot.slane %v3221_v36, %v590_v35  ;;  %v4185_v55 = vld [vmem:[%s478_s29] sm:$0xff]  ;;  %s486_s23 = scalar_lea.vmem %s4709_s13, %s4108_s15 }
  0x13   : > { %v599_v39 = vrot.slane %v591_v37, %v590_v35  ;;  %v592_v44 = vcombine.high %v591_v37, %v591_v37 }
  0x14   : > { %3710 = vmatpush3.bf16.msra.mxu0 %v3709_v17 }
  0x15   : > { %v4149_v40 = vrot.slane %v599_v39, %v4146_v38  ;;  %v606_v45 = vrot.slane %v592_v44, %v590_v35  ;;  %v607_v46 = vcombine.high %v599_v39, %v599_v39 }
  0x17   : > { %3452 = vmatmul.mubr.msk.f32.vlgmr.msra.gmra.mrb[0].mxu0 %vm497_vm1, %v487_v18  ;;  %v4159_v47 = vrot.slane %v606_v45, %v4146_v38  ;;  %v608_v48 = vcombine.high %v606_v45, %v606_v45  ;;  %v4162_v50 = vrot.slane %v607_v46, %v4146_v38 }
  0x19   : > { %v4169_v52 = vrot.slane %v608_v48, %v4146_v38 }
  0xea   : > { %v567_v23 = vpop.f32.mrb[0].mxu0 }
  0xeb   : > { %v4131_v24 = vadd.f32 %v567_v23, %v496_v22  ;;  %v3453_v25 = vpop.f32.mrb[1].mxu0 }
  0xed   : > { %3463 = vmatmul.mubr.msk.f32.vlgmr.msra.gmra.mrb[0].mxu1 %vm621_vm2, %v4131_v24 }
 0x1c0   : > { %v4151_v41 = vpop.f32.mrb[0].mxu1 }
 0x1c1   : > { %720 = vrot.lane.b32.xlu0 %v4151_v41, %s3980_s24  ;;  %v3464_v42 = vpop.f32.mrb[1].mxu1  ;;  %v715_v43 = vmul.f32 %v4149_v40, %v4151_v41  ;;  %v716_v51 = vmul.f32 %v4159_v47, %v4151_v41  ;;  %v717_v53 = vmul.f32 %v4162_v50, %v4151_v41  ;;  %v718_v54 = vmul.f32 %v4169_v52, %v4151_v41 }
 0x1c3   : > { %3467 = vmatprep.mubr.msk.f32.mxu1 %vm621_vm2, %v715_v43 }
 0x233   : > { %v721_v49 = vpop.permute.xlu0 %720 }
 0x234   : > { %3465 = vmatprep.subr.msk.mxu1 %vm621_vm2, %v721_v49 }
 0x235   : > { %3466 = vmatpush3.xpose.msk.msra.mxu1 %vm621_vm2, %v721_v49 }
 0x236   : > { %3717 = vmatprep.subr.bf16.mxu1 %v3976_v3 }
 0x238   : > { %3468 = vmatmul.mubr.msk.f32.vlgmr.msra.gmra.mrb[2].mxu1 %vm621_vm2, %v716_v51 }
 0x239   : > { %3470 = vmatprep.mubr.msk.f32.mxu1 %vm621_vm2, %v717_v53 }
 0x23c   : > { %3471 = vmatmul.mubr.msk.f32.gmra.mrb[4].mxu1 %vm621_vm2, %v718_v54 }
 0x23d   : > { %3489 = vmatprep.mubr.msk.f32.mxu1 %vm3977_vm0, %v3978_v6 }
 0x30b   : > { %v3469_v56 = vpop.f32.mrb[2].mxu1 }
 0x30c   : > { %v808_v57 = vadd.f32 %v3469_v56, %v4185_v55  ;;  %v802_v58 = vpop.f32.mrb[3].mxu1 }
 0x30d   : > { %v803_v59 = vadd.f32 %v802_v58, %v4185_v55 }
 0x30e   : > { %v825_v60 = vsel %vm821_vm6, %v808_v57, -inf }
 0x30f   : > { %826 = vmax.xlane.f32.xlu1 %v825_v60  ;;  %v3472_v61 = vpop.f32.mrb[4].mxu1  ;;  %v822_v62 = vsel %vm821_vm6, %v803_v59, -inf }
 0x310   : > { %v812_v63 = vpop.f32.mrb[5].mxu1  ;;  %823 = vmax.xlane.f32.xlu0 %v822_v62  ;;  %v818_v1 = vadd.f32 %v3472_v61, %v4185_v55 }
 0x311   : > { %v813_v0 = vadd.f32 %v812_v63, %v4185_v55 }
 0x312   : > { %v831_v4 = vsel %vm821_vm6, %v818_v1, -inf }
 0x313   : > { %v828_v2 = vsel %vm821_vm6, %v813_v0, -inf }
 0x314   : > { %829 = vmax.xlane.f32.xlu1 %v828_v2 }
 0x318   : > { %832 = vmax.xlane.f32.xlu1 %v831_v4 }
 0x326   : > { %3829 = vrot.lane.b32.xlu0 %v3828_v12, %s3982_s14 }
 0x39c   : > { %v827_v5 = vpop.xlane.xlu1 %826 }
 0x39d   : > { %v835_v8 = vsub.f32 %v808_v57, %v827_v5  ;;  %v824_v10 = vpop.xlane.xlu0 %823 }
 0x39e   : > { %v834_v11 = vsub.f32 %v803_v59, %v824_v10 }
 0x39f   : > { %v840_v13 = vmul.f32 1.442695, %v835_v8 }
 0x3a0   : > { %v838_v14 = vmul.f32 1.442695, %v834_v11 }
 0x3a1   : > { %3888 = vpow2.f32 %v840_v13  ;;  %v830_v15 = vpop.xlane.xlu1 %829  ;;  %v3830_v45 = vpop.permute.xlu0 %3829  ;;  %v4231_v13 = vld [vmem:[%s4703_s7] sm:$0xff] }
 0x3a2   : > { %3890 = vpow2.f32 %v838_v14  ;;  %v836_v16 = vsub.f32 %v813_v0, %v830_v15  ;;  %v3832_v46 = vunpack.i.h.bf16 %v3830_v45  ;;  %v3831_v48 = vunpack.i.l.bf16 %v3830_v45  ;;  %v4264_v45 = vld [vmem:[%s474_s16] sm:$0xff] }
 0x3a3   : > { %v980_v14 = vrot.slane %v4231_v13, %v4146_v38 }
 0x3a4   : > { %v842_v21 = vmul.f32 1.442695, %v836_v16  ;;  %v3718_v49 = vpack.c.bf16 %v3832_v46, %v3831_v48  ;;  %v1087_v46 = vsub.s32 1, %v4135_v27  ;;  %v1092_v48 = vsub.s32 2, %v4135_v27 }
 0x3a5   : > { %v833_v17 = vpop.xlane.xlu1 %832 }
 0x3a6   : > { %v837_v18 = vsub.f32 %v818_v1, %v833_v17  ;;  %3719 = vmatpush3.bf16.msra.mxu1 %v3718_v49  ;;  %v1088_v49 = vrot.slane %v4231_v13, %v1087_v46 }
 0x3a7   : > { %3720 = vmatprep.subr.bf16.mxu1 %v3976_v3 }
 0x3a8   : > { %v844_v22 = vmul.f32 1.442695, %v837_v18 }
 0x3aa   : > { %3892 = vpow2.f32 %v844_v22  ;;  %v614_v22 = vld [vmem:[%s4702_s6 + $0x8] sm:$0xff] }
 0x3ab   : > { %v3889_v23 = vpop.eup %3888  ;;  %3894 = vpow2.f32 %v842_v21 }
 0x3ac   : > { %v849_v25 = vsel %vm821_vm6, %v3889_v23, 0.0  ;;  %v3891_v26 = vpop.eup %3890 }
 0x3ad   : > { %850 = vadd.xlane.f32.xlu1 %v849_v25  ;;  %v846_v28 = vsel %vm821_vm6, %v3891_v26, 0.0 }
 0x3b1   : > { %847 = vadd.xlane.f32.xlu1 %v846_v28 }
 0x3b4   : > { %v3893_v30 = vpop.eup %3892 }
 0x3b5   : > { %v855_v31 = vsel %vm821_vm6, %v3893_v30, 0.0  ;;  %v3895_v32 = vpop.eup %3894 }
 0x3b6   : > { %856 = vadd.xlane.f32.xlu1 %v855_v31  ;;  %v852_v33 = vsel %vm821_vm6, %v3895_v32, 0.0 }
 0x3ba   : > { %853 = vadd.xlane.f32.xlu1 %v852_v33  ;;  %v620_v33 = vld [vmem:[%s4702_s6 + $0x38] sm:$0xff] }
 0x3cb   : > { %866 = vrot.lane.b32.xlu1 %v4151_v41, %s3981_s30 }
 0x3cf   : > { %3834 = vrot.lane.b32.xlu1 %v3833_v34, %s3982_s14 }
 0x43a   : > { %v851_v35 = vpop.xlane.xlu1 %850 }
 0x43b   : > { %3896 = vrcp.f32 %v851_v35 }
 0x43e   : > { %v848_v36 = vpop.xlane.xlu1 %847 }
 0x43f   : > { %3898 = vrcp.f32 %v848_v36 }
 0x443   : > { %v857_v37 = vpop.xlane.xlu1 %856 }
 0x444   : > { %3900 = vrcp.f32 %v857_v37 }
 0x445   : > { %v3897_v42 = vpop.eup %3896 }
 0x446   : > { %v861_v20 = vmul.f32 %v3897_v42, %v3889_v23  ;;  %v616_v23 = vld [vmem:[%s4702_s6 + $0x18] sm:$0xff] }
 0x447   : > { %v854_v39 = vpop.xlane.xlu1 %853  ;;  %v4243_v25 = vpack.i.bf16 %v616_v23, %v614_v22  ;;  %v3724_v42 = vpack.c.bf16 %v616_v23, %v614_v22 }
 0x448   : > { %3902 = vrcp.f32 %v854_v39 }
 0x449   : > { %v3899_v41 = vpop.eup %3898 }
 0x44a   : > { %v859_v43 = vmul.f32 %v3899_v41, %v3891_v26 }
 0x44b   : > { %v867_v19 = vpop.permute.xlu1 %866 }
 0x44c   : > { %3473 = vmatprep.subr.mxu0 %v867_v19  ;;  %3475 = vmatprep.mubr.msk.f32.mxu0 %vm821_vm6, %v859_v43 }
 0x44d   : > { %3474 = vmatpush3.msra.mxu0 %v867_v19 }
 0x44e   : > { %3476 = vmatmul.mubr.msk.f32.vlgmr.msra.gmra.mrb[2].mxu0 %vm821_vm6, %v861_v20  ;;  %3723 = vmatprep.subr.bf16.mxu0 %v3976_v3  ;;  %v3901_v7 = vpop.eup %3900 }
 0x44f   : > { %v865_v44 = vmul.f32 %v3901_v7, %v3893_v30  ;;  %v3835_v51 = vpop.permute.xlu1 %3834  ;;  %3725 = vmatpush3.bf16.msra.mxu0 %v3724_v42 }
 0x450   : > { %v3837_v53 = vunpack.i.h.bf16 %v3835_v51  ;;  %v3836_v54 = vunpack.i.l.bf16 %v3835_v51  ;;  %3726 = vmatprep.subr.bf16.mxu0 %v3976_v3 }
 0x452   : > { %v3903_v9 = vpop.eup %3902  ;;  %v3721_v56 = vpack.c.bf16 %v3837_v53, %v3836_v54  ;;  %v1093_v53 = vrot.slane %v4231_v13, %v1092_v48 }
 0x453   : > { %v863_v12 = vmul.f32 %v3903_v9, %v3895_v32  ;;  %v618_v32 = vld [vmem:[%s4702_s6 + $0x28] sm:$0xff] }
 0x454   : > { %3722 = vmatpush3.bf16.msra.mxu1 %v3721_v56  ;;  %v4254_v34 = vpack.i.bf16 %v620_v33, %v618_v32  ;;  %v3727_v41 = vpack.c.bf16 %v620_v33, %v618_v32 }
 0x455   : > { %3478 = vmatprep.mubr.msk.f32.mxu0 %vm821_vm6, %v863_v12  ;;  %3729 = vmatprep.subr.bf16.mxu1 %v3976_v3 }
 0x456   : > { %3479 = vmatmul.mubr.msk.f32.gmra.mrb[4].mxu0 %vm821_vm6, %v865_v44 }
 0x457   : > { %3500 = vmatprep.mubr.msk.f32.mxu0 %vm3977_vm0, %v3978_v6  ;;  %3728 = vmatpush3.bf16.msra.mxu0 %v3727_v41 }
 0x521   : > { %v3477_v57 = vpop.f32.mrb[2].mxu0 }
 0x522   : > { %v967_v58 = vmul.f32 %v3477_v57, %v4159_v47  ;;  %v947_v59 = vpop.f32.mrb[3].mxu0 }
 0x523   : > { %v966_v60 = vmul.f32 %v947_v59, %v4149_v40 }
 0x524   : > { %v971_v61 = vsel %vm621_vm2, %v967_v58, 0.0 }
 0x525   : > { %v970_v62 = vsel %vm621_vm2, %v966_v60, 0.0 }
 0x526   : > { %v972_v63 = vadd.f32 %v971_v61, %v970_v62 }
 0x529   : > { %v3480_v0 = vpop.f32.mrb[4].mxu0 }
 0x52a   : > { %v957_v1 = vpop.f32.mrb[5].mxu0  ;;  %v969_v2 = vmul.f32 %v3480_v0, %v4169_v52 }
 0x52b   : > { %v968_v4 = vmul.f32 %v957_v1, %v4162_v50 }
 0x52c   : > { %v975_v10 = vsel %vm621_vm2, %v969_v2, 0.0  ;;  %v4297_v2 = vld [vmem:[%s482_s19] sm:$0xff] }
 0x52d   : > { %v973_v5 = vsel %vm621_vm2, %v968_v4, 0.0 }
 0x52e   : > { %v974_v8 = vadd.f32 %v973_v5, %v972_v63 }
 0x530   : > { %v976_v11 = vadd.f32 %v975_v10, %v974_v8 }
 0x532   : > { %3490 = vmatmul.mubr.msk.f32.vlgmr.msra.gmra.mrb[6].mxu1 %vm621_vm2, %v976_v11 }
 0x533   : > { %3511 = vmatprep.mubr.msk.f32.mxu1 %vm3977_vm0, %v3978_v6 }
 0x605   : > { %v1066_v15 = vpop.f32.mrb[6].mxu1 }
 0x606   : > { %v1067_v16 = vadd.f32 %v1066_v15, %v980_v14  ;;  %v3491_v17 = vpop.f32.mrb[7].mxu1 }
 0x608   : > { %v1070_v18 = vadd.f32 %v1067_v16, %v4131_v24 }
 0x60a   : > { %v1071_v21 = vsel %vm621_vm2, %v1070_v18, 0.0 }
 0x60b   : > { %1072 = vadd.xlane.f32.xlu1 %v1071_v21 }
 0x61c   : > { %3839 = vrot.lane.b32.xlu1 %v4243_v25, %s3980_s24 }
 0x698   : > { %v1073_v26 = vpop.xlane.xlu1 %1072 }
 0x699   : > { %v1075_v28 = vmul.f32 0.03125, %v1073_v26 }
 0x69b   : > { %v1076_v30 = vsub.f32 %v1070_v18, %v1075_v28 }
 0x69c   : > { %v3840_v35 = vpop.permute.xlu1 %3839 }
 0x69d   : > { %v1077_v24 = vmul.f32 %v1076_v30, %v1076_v30  ;;  %v3842_v36 = vunpack.i.h.bf16 %v3840_v35  ;;  %v3841_v37 = vunpack.i.l.bf16 %v3840_v35 }
 0x69f   : > { %v1078_v31 = vsel %vm621_vm2, %v1077_v24, 0.0  ;;  %v3730_v39 = vpack.c.bf16 %v3842_v36, %v3841_v37 }
 0x6a0   : > { %1079 = vadd.xlane.f32.xlu0 %v1078_v31 }
 0x6a1   : > { %3731 = vmatpush3.bf16.msra.mxu1 %v3730_v39 }
 0x6a2   : > { %3732 = vmatprep.subr.bf16.mxu1 %v3976_v3 }
 0x6b6   : > { %3844 = vrot.lane.b32.xlu0 %v4254_v34, %s3980_s24 }
 0x72d   : > { %v1080_v43 = vpop.xlane.xlu0 %1079 }
 0x72e   : > { %v1081_v19 = vmul.f32 0.03125, %v1080_v43 }
 0x730   : > { %v1082_v20 = vadd.f32 1e-05, %v1081_v19 }
 0x731   : > { %v3845_v7 = vpop.permute.xlu0 %3844 }
 0x732   : > { %3904 = vrsqrt.f32 %v1082_v20  ;;  %v3847_v9 = vunpack.i.h.bf16 %v3845_v7  ;;  %v3846_v12 = vunpack.i.l.bf16 %v3845_v7 }
 0x734   : > { %v3733_v44 = vpack.c.bf16 %v3847_v9, %v3846_v12 }
 0x736   : > { %3734 = vmatpush3.bf16.msra.mxu1 %v3733_v44 }
 0x739   : > { %3512 = vmatmul.mubr.msk.f32.vlgmr.msra.gmra.mrb[8].mxu1 %vm621_vm2, %v4264_v45 }
 0x73c   : > { %v3905_v51 = vpop.eup %3904 }
 0x73d   : > { %v1084_v54 = vmul.f32 %v3905_v51, %v1076_v30 }
 0x73f   : > { %v1089_v56 = vmul.f32 %v1088_v49, %v1084_v54 }
 0x741   : > { %v4276_v57 = vadd.f32 %v1093_v53, %v1089_v56 }
 0x743   : > { %3501 = vmatmul.mubr.msk.f32.vlgmr.msra.gmra.mrb[6].mxu0 %vm621_vm2, %v4276_v57 }
 0x80c   : > { %v1253_v58 = vpop.f32.mrb[8].mxu1 }
 0x80d   : > { %v3513_v59 = vpop.f32.mrb[9].mxu1  ;;  %3514 = vmatprep.subr.msk.mxu0 %vm621_vm2, %v1253_v58 }
 0x80e   : > { %3515 = vmatpush3.xpose.msk.msra.mxu0 %vm621_vm2, %v1253_v58 }
 0x80f   : > { %3735 = vmatprep.subr.bf16.mxu0 %v3976_v3 }
 0x816   : > { %v1164_v60 = vpop.f32.mrb[6].mxu0 }
 0x817   : > { %v1257_v61 = vmul.f32 %v1164_v60, %v4149_v40  ;;  %v1258_v62 = vmul.f32 %v1164_v60, %v4159_v47  ;;  %v3502_v63 = vpop.f32.mrb[7].mxu0  ;;  %v1259_v0 = vmul.f32 %v1164_v60, %v4162_v50  ;;  %v1260_v1 = vmul.f32 %v1164_v60, %v4169_v52 }
 0x819   : > { %3516 = vmatprep.mubr.msk.f32.mxu0 %vm621_vm2, %v1257_v61 }
 0x81a   : > { %3517 = vmatmul.mubr.msk.f32.vlgmr.msra.gmra.mrb[8].mxu0 %vm621_vm2, %v1258_v62 }
 0x81b   : > { %3519 = vmatprep.mubr.msk.f32.mxu0 %vm621_vm2, %v1259_v0 }
 0x81e   : > { %3520 = vmatmul.mubr.msk.f32.gmra.mrb[10].mxu0 %vm621_vm2, %v1260_v1 }
 0x81f   : > { %3538 = vmatprep.mubr.msk.f32.mxu0 %vm3977_vm0, %v3978_v6 }
 0x8ed   : > { %v3518_v4 = vpop.f32.mrb[8].mxu0 }
 0x8ee   : > { %v1348_v5 = vadd.f32 %v3518_v4, %v4297_v2  ;;  %v1342_v8 = vpop.f32.mrb[9].mxu0 }
 0x8ef   : > { %v1343_v10 = vadd.f32 %v1342_v8, %v4297_v2 }
 0x8f0   : > { %v1364_v11 = vsel %vm821_vm6, %v1348_v5, -inf }
 0x8f1   : > { %1365 = vmax.xlane.f32.xlu0 %v1364_v11  ;;  %v3521_v14 = vpop.f32.mrb[10].mxu0  ;;  %v1361_v15 = vsel %vm821_vm6, %v1343_v10, -inf }
 0x8f2   : > { %v1358_v16 = vadd.f32 %v3521_v14, %v4297_v2  ;;  %v1352_v17 = vpop.f32.mrb[11].mxu0  ;;  %1362 = vmax.xlane.f32.xlu1 %v1361_v15 }
 0x8f3   : > { %v1353_v18 = vadd.f32 %v1352_v17, %v4297_v2 }
 0x8f4   : > { %v1370_v21 = vsel %vm821_vm6, %v1358_v16, -inf }
 0x8f5   : > { %1371 = vmax.xlane.f32.xlu0 %v1370_v21  ;;  %v1367_v22 = vsel %vm821_vm6, %v1353_v18, -inf }
 0x8f6   : > { %1368 = vmax.xlane.f32.xlu1 %v1367_v22 }
 0x97e   : > { %v1366_v23 = vpop.xlane.xlu0 %1365 }
 0x97f   : > { %v1374_v26 = vsub.f32 %v1348_v5, %v1366_v23  ;;  %v1363_v28 = vpop.xlane.xlu1 %1362 }
 0x980   : > { %v1373_v30 = vsub.f32 %v1343_v10, %v1363_v28 }
 0x981   : > { %v1379_v24 = vmul.f32 1.442695, %v1374_v26 }
 0x982   : > { %v1377_v31 = vmul.f32 1.442695, %v1373_v30  ;;  %v1372_v32 = vpop.xlane.xlu0 %1371 }
 0x983   : > { %3906 = vpow2.f32 %v1379_v24  ;;  %v1376_v33 = vsub.f32 %v1358_v16, %v1372_v32  ;;  %v1369_v35 = vpop.xlane.xlu1 %1368 }
 0x984   : > { %3908 = vpow2.f32 %v1377_v31  ;;  %v1375_v36 = vsub.f32 %v1353_v18, %v1369_v35  ;;  %v1518_v35 = vsub.s32 3, %v4135_v27 }
 0x985   : > { %v1383_v37 = vmul.f32 1.442695, %v1376_v33 }
 0x986   : > { %v1381_v39 = vmul.f32 1.442695, %v1375_v36  ;;  %v1519_v36 = vrot.slane %v4231_v13, %v1518_v35 }
 0x987   : > { %3910 = vpow2.f32 %v1383_v37 }
 0x988   : > { %3912 = vpow2.f32 %v1381_v39 }
 0x98d   : > { %v3907_v42 = vpop.eup %3906 }
 0x98e   : > { %v3909_v41 = vpop.eup %3908  ;;  %v1388_v43 = vsel %vm821_vm6, %v3907_v42, 0.0 }
 0x98f   : > { %1389 = vadd.xlane.f32.xlu0 %v1388_v43  ;;  %v1385_v19 = vsel %vm821_vm6, %v3909_v41, 0.0 }
 0x990   : > { %1386 = vadd.xlane.f32.xlu1 %v1385_v19 }
 0x991   : > { %v3911_v20 = vpop.eup %3910 }
 0x992   : > { %v3913_v7 = vpop.eup %3912  ;;  %v1394_v9 = vsel %vm821_vm6, %v3911_v20, 0.0 }
 0x993   : > { %1395 = vadd.xlane.f32.xlu0 %v1394_v9  ;;  %v1391_v12 = vsel %vm821_vm6, %v3913_v7, 0.0 }
 0x994   : > { %1392 = vadd.xlane.f32.xlu1 %v1391_v12 }
 0x9a5   : > { %1405 = vrot.lane.b32.xlu1 %v1253_v58, %s3980_s24 }
 0x9a9   : > { %3849 = vrot.lane.b32.xlu0 %v4243_v25, %s3982_s14  ;;  %3854 = vrot.lane.b32.xlu1 %v4254_v34, %s3982_s14 }
 0xa1c   : > { %v1390_v44 = vpop.xlane.xlu0 %1389 }
 0xa1d   : > { %3914 = vrcp.f32 %v1390_v44  ;;  %v1387_v49 = vpop.xlane.xlu1 %1386  ;;  %v1629_v44 = vld [vmem:[%s4704_s8] sm:$0xff] }
 0xa1e   : > { %3916 = vrcp.f32 %v1387_v49  ;;  %v1630_v49 = vld [vmem:[%s4704_s8 + $0x8] sm:$0xff] }
 0xa20   : > { %v1396_v51 = vpop.xlane.xlu0 %1395 }
 0xa21   : > { %3918 = vrcp.f32 %v1396_v51  ;;  %v1393_v53 = vpop.xlane.xlu1 %1392  ;;  %v3742_v51 = vpack.c.bf16 %v1630_v49, %v1629_v44  ;;  %v4420_v44 = vld [vmem:[%s4702_s6 + $0x60] sm:$0xff]  ;;  %v4425_v49 = vld [vmem:[%s4702_s6 + $0x70] sm:$0xff] }
 0xa22   : > { %3920 = vrcp.f32 %v1393_v53  ;;  %v1632_v53 = vld [vmem:[%s4704_s8 + $0x18] sm:$0xff] }
 0xa24   : > { %v3850_v63 = vpop.permute.xlu0 %3849 }
 0xa25   : > { %v1406_v54 = vpop.permute.xlu1 %1405  ;;  %v3852_v0 = vunpack.i.h.bf16 %v3850_v63  ;;  %v3851_v1 = vunpack.i.l.bf16 %v3850_v63 }
 0xa26   : > { %3522 = vmatprep.subr.mxu1 %v1406_v54 }
 0xa27   : > { %v3915_v56 = vpop.eup %3914  ;;  %3523 = vmatpush3.msra.mxu1 %v1406_v54  ;;  %v3736_v4 = vpack.c.bf16 %v3852_v0, %v3851_v1 }
 0xa28   : > { %v3917_v59 = vpop.eup %3916  ;;  %3741 = vmatprep.subr.bf16.mxu1 %v3976_v3  ;;  %v1400_v25 = vmul.f32 %v3915_v56, %v3907_v42  ;;  %v1714_v56 = vld [vmem:[%s4706_s10] sm:$0xff] }
 0xa29   : > { %v1398_v58 = vmul.f32 %v3917_v59, %v3909_v41  ;;  %v3855_v5 = vpop.permute.xlu1 %3854  ;;  %3737 = vmatpush3.bf16.msra.mxu0 %v3736_v4  ;;  %v1715_v59 = vld [vmem:[%s4706_s10 + $0x8] sm:$0xff] }
 0xa2a   : > { %v3857_v8 = vunpack.i.h.bf16 %v3855_v5  ;;  %v3856_v10 = vunpack.i.l.bf16 %v3855_v5  ;;  %3738 = vmatprep.subr.bf16.mxu0 %v3976_v3  ;;  %v1621_v5 = vsub.s32 4, %v4135_v27 }
 0xa2b   : > { %v3919_v60 = vpop.eup %3918  ;;  %3524 = vmatprep.mubr.msk.f32.mxu1 %vm821_vm6, %v1398_v58  ;;  %v1716_v58 = vld [vmem:[%s4706_s10 + $0x10] sm:$0xff] }
 0xa2c   : > { %v3921_v34 = vpop.eup %3920  ;;  %3525 = vmatmul.mubr.msk.f32.vlgmr.msra.gmra.mrb[10].mxu1 %vm821_vm6, %v1400_v25  ;;  %v1404_v62 = vmul.f32 %v3919_v60, %v3911_v20  ;;  %v3739_v11 = vpack.c.bf16 %v3857_v8, %v3856_v10  ;;  %v3748_v25 = vpack.c.bf16 %v1715_v59, %v1714_v56  ;;  %v1717_v60 = vld [vmem:[%s4706_s10 + $0x18] sm:$0xff]  ;;  %v1626_v8 = vsub.s32 5, %v4135_v27 }
 0xa2d   : > { %v1402_v61 = vmul.f32 %v3921_v34, %v3913_v7  ;;  %3743 = vmatpush3.bf16.msra.mxu1 %v3742_v51  ;;  %v3751_v34 = vpack.c.bf16 %v1717_v60, %v1716_v58  ;;  %v1622_v10 = vrot.slane %v4231_v13, %v1621_v5  ;;  %v3763_v51 = vpack.c.bf16 %v4425_v49, %v4420_v44 }
 0xa2e   : > { %3740 = vmatpush3.bf16.msra.mxu0 %v3739_v11  ;;  %3744 = vmatprep.subr.bf16.mxu1 %v3976_v3  ;;  %v1815_v56 = vsub.s32 6, %v4135_v27  ;;  %v1820_v59 = vsub.s32 7, %v4135_v27 }
 0xa2f   : > { %3527 = vmatprep.mubr.msk.f32.mxu1 %vm821_vm6, %v1402_v61  ;;  %3747 = vmatprep.subr.bf16.mxu0 %v3976_v3  ;;  %v1718_v61 = vld [vmem:[%s4706_s10 + $0x20] sm:$0xff] }
 0xa30   : > { %3528 = vmatmul.mubr.msk.f32.gmra.mrb[12].mxu1 %vm821_vm6, %v1404_v62  ;;  %v1719_v62 = vld [vmem:[%s4706_s10 + $0x28] sm:$0xff]  ;;  %v1816_v58 = vrot.slane %v4231_v13, %v1815_v56 }
 0xa31   : > { %3549 = vmatprep.mubr.msk.f32.mxu1 %vm3977_vm0, %v3978_v6  ;;  %v3754_v63 = vpack.c.bf16 %v1719_v62, %v1718_v61 }
 0xaff   : > { %v3526_v14 = vpop.f32.mrb[10].mxu1 }
 0xb00   : > { %v1506_v15 = vmul.f32 %v3526_v14, %v4159_v47  ;;  %v1486_v16 = vpop.f32.mrb[11].mxu1  ;;  %v1627_v14 = vrot.slane %v4231_v13, %v1626_v8 }
 0xb01   : > { %v1505_v17 = vmul.f32 %v1486_v16, %v4149_v40 }
 0xb02   : > { %v1510_v18 = vsel %vm621_vm2, %v1506_v15, 0.0 }
 0xb03   : > { %v1509_v21 = vsel %vm621_vm2, %v1505_v17, 0.0  ;;  %v3529_v22 = vpop.f32.mrb[12].mxu1 }
 0xb04   : > { %v1511_v23 = vadd.f32 %v1510_v18, %v1509_v21  ;;  %v1496_v26 = vpop.f32.mrb[13].mxu1  ;;  %v1508_v28 = vmul.f32 %v3529_v22, %v4169_v52  ;;  %v1720_v18 = vld [vmem:[%s4706_s10 + $0x30] sm:$0xff]  ;;  %v1721_v21 = vld [vmem:[%s4706_s10 + $0x38] sm:$0xff] }
 0xb05   : > { %v1507_v30 = vmul.f32 %v1496_v26, %v4162_v50  ;;  %v3757_v22 = vpack.c.bf16 %v1721_v21, %v1720_v18 }
 0xb06   : > { %v1514_v32 = vsel %vm621_vm2, %v1508_v28, 0.0 }
 0xb07   : > { %v1512_v24 = vsel %vm621_vm2, %v1507_v30, 0.0 }
 0xb08   : > { %v1513_v31 = vadd.f32 %v1512_v24, %v1511_v23  ;;  %v3245_v23 = vld [vmem:[%s4705_s9] ss:$0 sm:$0xff] }
 0xb0a   : > { %v1515_v33 = vadd.f32 %v1514_v32, %v1513_v31  ;;  %v3247_v31 = vld [vmem:[%s4703_s7 + $0x8] ss:$0 sm:$0xff] }
 0xb0c   : > { %3539 = vmatmul.mubr.msk.f32.vlgmr.msra.gmra.mrb[12].mxu0 %vm621_vm2, %v1515_v33 }
 0xb0d   : > { %3568 = vmatprep.mubr.msk.f32.mxu0 %vm3977_vm0, %v3978_v6  ;;  %3749 = vmatpush3.bf16.msra.mxu0 %v3748_v25 }
 0xb0e   : > { %3750 = vmatprep.subr.bf16.mxu0 %v3976_v3 }
 0xb11   : > { %3752 = vmatpush3.bf16.msra.mxu0 %v3751_v34  ;;  %v1821_v34 = vrot.slane %v4231_v13, %v1820_v59 }
 0xb12   : > { %3753 = vmatprep.subr.bf16.mxu0 %v3976_v3 }
 0xb15   : > { %3755 = vmatpush3.bf16.msra.mxu0 %v3754_v63 }
 0xb16   : > { %3756 = vmatprep.subr.bf16.mxu0 %v3976_v3 }
 0xb19   : > { %3758 = vmatpush3.bf16.msra.mxu0 %v3757_v22 }
 0xbdf   : > { %v1601_v37 = vpop.f32.mrb[12].mxu0 }
 0xbe0   : > { %v1602_v39 = vadd.f32 %v1601_v37, %v1519_v36  ;;  %v3540_v42 = vpop.f32.mrb[13].mxu0 }
 0xbe2   : > { %v1605_v41 = vadd.f32 %v1602_v39, %v4276_v57  ;;  %v1631_v57 = vld [vmem:[%s4704_s8 + $0x10] sm:$0xff] }
 0xbe3   : > { %v3745_v54 = vpack.c.bf16 %v1632_v53, %v1631_v57 }
 0xbe4   : > { %v1606_v43 = vsel %vm621_vm2, %v1605_v41, 0.0 }
 0xbe5   : > { %1607 = vadd.xlane.f32.xlu1 %v1606_v43  ;;  %3746 = vmatpush3.bf16.msra.mxu1 %v3745_v54 }
 0xbe6   : > { %3759 = vmatprep.subr.bf16.mxu1 %v3976_v3 }
 0xc72   : > { %v1608_v19 = vpop.xlane.xlu1 %1607 }
 0xc73   : > { %v1609_v20 = vmul.f32 0.03125, %v1608_v19 }
 0xc75   : > { %v1610_v7 = vsub.f32 %v1605_v41, %v1609_v20 }
 0xc77   : > { %v1611_v9 = vmul.f32 %v1610_v7, %v1610_v7 }
 0xc79   : > { %v1612_v12 = vsel %vm621_vm2, %v1611_v9, 0.0  ;;  %v4412_v9 = vld [vmem:[%s4702_s6 + $0x50] sm:$0xff] }
 0xc7a   : > { %1613 = vadd.xlane.f32.xlu0 %v1612_v12 }
 0xd07   : > { %v1614_v0 = vpop.xlane.xlu0 %1613 }
 0xd08   : > { %v1615_v1 = vmul.f32 0.03125, %v1614_v0 }
 0xd0a   : > { %v1616_v4 = vadd.f32 1e-05, %v1615_v1 }
 0xd0c   : > { %3922 = vrsqrt.f32 %v1616_v4 }
 0xd16   : > { %v3923_v11 = vpop.eup %3922 }
 0xd17   : > { %v1618_v15 = vmul.f32 %v3923_v11, %v1610_v7  ;;  %v4407_v7 = vld [vmem:[%s4702_s6 + $0x40] sm:$0xff] }
 0xd18   : > { %v3760_v12 = vpack.c.bf16 %v4412_v9, %v4407_v7 }
 0xd19   : > { %v1623_v16 = vmul.f32 %v1622_v10, %v1618_v15 }
 0xd1b   : > { %v1628_v17 = vadd.f32 %v1627_v14, %v1623_v16 }
 0xd1d   : > { %3550 = vmatmul.mubr.msk.f32.vlgmr.msra.gmra.mrb[14].mxu1 %vm621_vm2, %v1628_v17 }
 0xd1e   : > { %3579 = vmatprep.mubr.msk.f32.mxu1 %vm3977_vm0, %v3978_v6  ;;  %3761 = vmatpush3.bf16.msra.mxu1 %v3760_v12 }
 0xd1f   : > { %3762 = vmatprep.subr.bf16.mxu1 %v3976_v3 }
 0xd22   : > { %3764 = vmatpush3.bf16.msra.mxu1 %v3763_v51 }
 0xdf0   : > { %v1709_v26 = vpop.f32.mrb[14].mxu1 }
 0xdf1   : > { %v1710_v28 = vadd.f32 %v3245_v23, %v1709_v26  ;;  %v3551_v30 = vpop.f32.mrb[15].mxu1 }
 0xdf3   : > { %v1713_v24 = vmax.f32 %v1710_v28, 0.0 }
 0xdf5   : > { %3569 = vmatmul.mubr.msk.f32.vlgmr.msra.gmra.mrb[14].mxu0 %vm497_vm1, %v1713_v24 }
 0xec8   : > { %v1795_v32 = vpop.f32.mrb[14].mxu0 }
 0xec9   : > { %v1796_v33 = vadd.f32 %v3247_v31, %v1795_v32  ;;  %v3570_v36 = vpop.f32.mrb[15].mxu0 }
 0xecb   : > { %v1799_v37 = vadd.f32 %v1796_v33, %v1628_v17 }
 0xecd   : > { %v1800_v39 = vsel %vm621_vm2, %v1799_v37, 0.0 }
 0xece   : > { %1801 = vadd.xlane.f32.xlu0 %v1800_v39 }
 0xf5b   : > { %v1802_v42 = vpop.xlane.xlu0 %1801 }
 0xf5c   : > { %v1803_v41 = vmul.f32 0.03125, %v1802_v42 }
 0xf5e   : > { %v1804_v43 = vsub.f32 %v1799_v37, %v1803_v41 }
 0xf60   : > { %v1805_v19 = vmul.f32 %v1804_v43, %v1804_v43 }
 0xf62   : > { %v1806_v20 = vsel %vm621_vm2, %v1805_v19, 0.0 }
 0xf63   : > { %1807 = vadd.xlane.f32.xlu1 %v1806_v20 }
 0xff0   : > { %v1808_v57 = vpop.xlane.xlu1 %1807 }
 0xff1   : > { %v1809_v53 = vmul.f32 0.03125, %v1808_v57 }
 0xff3   : > { %v1810_v54 = vadd.f32 1e-05, %v1809_v53 }
 0xff5   : > { %3924 = vrsqrt.f32 %v1810_v54 }
 0xfff   : > { %v3925_v25 = vpop.eup %3924 }
0x1000   : > { %v1812_v60 = vmul.f32 %v3925_v25, %v1804_v43 }
0x1002   : > { %v1817_v61 = vmul.f32 %v1816_v58, %v1812_v60 }
0x1004   : > { %v4437_v62 = vadd.f32 %v1821_v34, %v1817_v61  ;;  %v3858_v34 = vpack.i.bf16 %v4412_v9, %v4407_v7  ;;  %v3863_v61 = vpack.i.bf16 %v4425_v49, %v4420_v44 }
0x1006   : > { %3580 = vmatmul.mubr.msk.f32.vlgmr.msra.gmra.mrb[16].mxu1 %vm621_vm2, %v4437_v62 }
0x10d9   : > { %v1904_v63 = vpop.f32.mrb[16].mxu1 }
0x10da   : > { %1913 = vrot.lane.b32.xlu0 %v1904_v63, %s3980_s24  ;;  %v3581_v0 = vpop.f32.mrb[17].mxu1  ;;  %v1908_v1 = vmul.f32 %v1904_v63, %v4149_v40  ;;  %v1909_v13 = vmul.f32 %v1904_v63, %v4159_v47  ;;  %v1910_v10 = vmul.f32 %v1904_v63, %v4162_v50  ;;  %v1911_v11 = vmul.f32 %v1904_v63, %v4169_v52 }
0x10dc   : > { %3584 = vmatprep.mubr.msk.f32.mxu1 %vm621_vm2, %v1908_v1 }
0x114c   : > { %v1914_v4 = vpop.permute.xlu0 %1913 }
0x114d   : > { %3582 = vmatprep.subr.msk.mxu1 %vm621_vm2, %v1914_v4 }
0x114e   : > { %3583 = vmatpush3.xpose.msk.msra.mxu1 %vm621_vm2, %v1914_v4 }
0x114f   : > { %3765 = vmatprep.subr.bf16.mxu1 %v3976_v3 }
0x1151   : > { %3585 = vmatmul.mubr.msk.f32.vlgmr.msra.gmra.mrb[18].mxu1 %vm621_vm2, %v1909_v13 }
0x1152   : > { %3587 = vmatprep.mubr.msk.f32.mxu1 %vm621_vm2, %v1910_v10 }
0x1155   : > { %3588 = vmatmul.mubr.msk.f32.gmra.mrb[20].mxu1 %vm621_vm2, %v1911_v11 }
0x1156   : > { %3606 = vmatprep.mubr.msk.f32.mxu1 %vm3977_vm0, %v3978_v6 }
0x1224   : > { %v3586_v14 = vpop.f32.mrb[18].mxu1 }
0x1225   : > { %v2001_v15 = vadd.f32 %v3586_v14, %v4185_v55  ;;  %v1995_v16 = vpop.f32.mrb[19].mxu1 }
0x1226   : > { %v1996_v17 = vadd.f32 %v1995_v16, %v4185_v55 }
0x1227   : > { %v2017_v18 = vsel %vm821_vm6, %v2001_v15, -inf }
0x1228   : > { %2018 = vmax.xlane.f32.xlu1 %v2017_v18  ;;  %v3589_v21 = vpop.f32.mrb[20].mxu1  ;;  %v2014_v26 = vsel %vm821_vm6, %v1996_v17, -inf }
0x1229   : > { %v2005_v22 = vpop.f32.mrb[21].mxu1  ;;  %v2011_v28 = vadd.f32 %v3589_v21, %v4185_v55 }
0x122a   : > { %v2006_v23 = vadd.f32 %v2005_v22, %v4185_v55 }
0x122b   : > { %v2023_v24 = vsel %vm821_vm6, %v2011_v28, -inf }
0x122c   : > { %2015 = vmax.xlane.f32.xlu1 %v2014_v26  ;;  %v2020_v30 = vsel %vm821_vm6, %v2006_v23, -inf }
0x1230   : > { %2021 = vmax.xlane.f32.xlu1 %v2020_v30 }
0x1234   : > { %2024 = vmax.xlane.f32.xlu1 %v2023_v24 }
0x12b5   : > { %v2019_v31 = vpop.xlane.xlu1 %2018 }
0x12b6   : > { %v2027_v32 = vsub.f32 %v2001_v15, %v2019_v31 }
0x12b8   : > { %v2032_v33 = vmul.f32 1.442695, %v2027_v32 }
0x12b9   : > { %v2016_v36 = vpop.xlane.xlu1 %2015 }
0x12ba   : > { %3926 = vpow2.f32 %v2032_v33  ;;  %v2026_v37 = vsub.f32 %v1996_v17, %v2016_v36 }
0x12bc   : > { %v2030_v39 = vmul.f32 1.442695, %v2026_v37 }
0x12bd   : > { %v2022_v42 = vpop.xlane.xlu1 %2021 }
0x12be   : > { %3928 = vpow2.f32 %v2030_v39  ;;  %v2028_v41 = vsub.f32 %v2006_v23, %v2022_v42 }
0x12c0   : > { %v2034_v43 = vmul.f32 1.442695, %v2028_v41 }
0x12c1   : > { %v2025_v19 = vpop.xlane.xlu1 %2024 }
0x12c2   : > { %3930 = vpow2.f32 %v2034_v43  ;;  %v2029_v55 = vsub.f32 %v2011_v28, %v2025_v19 }
0x12c4   : > { %v3927_v20 = vpop.eup %3926  ;;  %v2036_v12 = vmul.f32 1.442695, %v2029_v55 }
0x12c5   : > { %v2041_v51 = vsel %vm821_vm6, %v3927_v20, 0.0 }
0x12c6   : > { %3932 = vpow2.f32 %v2036_v12  ;;  %2042 = vadd.xlane.f32.xlu1 %v2041_v51  ;;  %v4497_v51 = vld [vmem:[%s4703_s7 + $0x10] sm:$0xff] }
0x12c8   : > { %v3929_v57 = vpop.eup %3928 }
0x12c9   : > { %v2038_v53 = vsel %vm821_vm6, %v3929_v57, 0.0 }
0x12ca   : > { %2039 = vadd.xlane.f32.xlu1 %v2038_v53 }
0x12cc   : > { %v3931_v54 = vpop.eup %3930 }
0x12cd   : > { %v2044_v58 = vsel %vm821_vm6, %v3931_v54, 0.0 }
0x12ce   : > { %2045 = vadd.xlane.f32.xlu0 %v2044_v58 }
0x12d0   : > { %v3933_v25 = vpop.eup %3932 }
0x12d1   : > { %v2047_v60 = vsel %vm821_vm6, %v3933_v25, 0.0 }
0x12d2   : > { %2048 = vadd.xlane.f32.xlu1 %v2047_v60 }
0x12e3   : > { %2058 = vrot.lane.b32.xlu1 %v1904_v63, %s3981_s30 }
0x12e7   : > { %3859 = vrot.lane.b32.xlu1 %v3858_v34, %s3982_s14  ;;  %v3252_v34 = vld [vmem:[%s4702_s6 + $0x48] sm:$0xff] }
0x12eb   : > { %3864 = vrot.lane.b32.xlu1 %v3863_v61, %s3982_s14  ;;  %v3254_v61 = vld [vmem:[%s4702_s6 + $0x58] sm:$0xff] }
0x1353   : > { %v2043_v0 = vpop.xlane.xlu1 %2042 }
0x1354   : > { %3934 = vrcp.f32 %v2043_v0  ;;  %v4512_v0 = vpack.i.bf16 %v3254_v61, %v3252_v34 }
0x1357   : > { %v2040_v1 = vpop.xlane.xlu1 %2039 }
0x1358   : > { %3936 = vrcp.f32 %v2040_v1 }
0x135b   : > { %v2046_v4 = vpop.xlane.xlu0 %2045 }
0x135c   : > { %3938 = vrcp.f32 %v2046_v4 }
0x135e   : > { %v3935_v10 = vpop.eup %3934 }
0x135f   : > { %v2049_v13 = vpop.xlane.xlu1 %2048  ;;  %v2053_v7 = vmul.f32 %v3935_v10, %v3927_v20 }
0x1360   : > { %3940 = vrcp.f32 %v2049_v13 }
0x1362   : > { %v3937_v63 = vpop.eup %3936 }
0x1363   : > { %v2059_v11 = vpop.permute.xlu1 %2058  ;;  %v2051_v14 = vmul.f32 %v3937_v63, %v3929_v57  ;;  %v2172_v57 = vrot.slane %v4497_v51, %v4146_v38  ;;  %v3256_v38 = vld [vmem:[%s4702_s6 + $0x68] sm:$0xff] }
0x1364   : > { %3590 = vmatprep.subr.mxu0 %v2059_v11 }
0x1365   : > { %3591 = vmatpush3.msra.mxu0 %v2059_v11  ;;  %3592 = vmatprep.mubr.msk.f32.mxu0 %vm821_vm6, %v2051_v14 }
0x1366   : > { %v3939_v9 = vpop.eup %3938  ;;  %3593 = vmatmul.mubr.msk.f32.vlgmr.msra.gmra.mrb[16].mxu0 %vm821_vm6, %v2053_v7  ;;  %3771 = vmatprep.subr.bf16.mxu0 %v3976_v3 }
0x1367   : > { %v2055_v44 = vmul.f32 %v3939_v9, %v3931_v54  ;;  %v3860_v16 = vpop.permute.xlu1 %3859 }
0x1368   : > { %v3862_v17 = vunpack.i.h.bf16 %v3860_v16  ;;  %v3861_v18 = vunpack.i.l.bf16 %v3860_v16 }
0x1369   : > { %3595 = vmatprep.mubr.msk.f32.mxu0 %vm821_vm6, %v2055_v44 }
0x136a   : > { %v3941_v49 = vpop.eup %3940  ;;  %v3766_v21 = vpack.c.bf16 %v3862_v17, %v3861_v18  ;;  %v3772_v17 = vpack.c.bf16 %v3254_v61, %v3252_v34 }
0x136b   : > { %v2057_v15 = vmul.f32 %v3941_v49, %v3933_v25  ;;  %v3865_v22 = vpop.permute.xlu1 %3864 }
0x136c   : > { %v3867_v23 = vunpack.i.h.bf16 %v3865_v22  ;;  %v3866_v26 = vunpack.i.l.bf16 %v3865_v22  ;;  %3767 = vmatpush3.bf16.msra.mxu1 %v3766_v21  ;;  %3773 = vmatpush3.bf16.msra.mxu0 %v3772_v17 }
0x136d   : > { %3596 = vmatmul.mubr.msk.f32.gmra.mrb[18].mxu0 %vm821_vm6, %v2057_v15  ;;  %3768 = vmatprep.subr.bf16.mxu1 %v3976_v3 }
0x136e   : > { %3617 = vmatprep.mubr.msk.f32.mxu0 %vm3977_vm0, %v3978_v6  ;;  %v3769_v28 = vpack.c.bf16 %v3867_v23, %v3866_v26  ;;  %3774 = vmatprep.subr.bf16.mxu0 %v3976_v3 }
0x1370   : > { %3770 = vmatpush3.bf16.msra.mxu1 %v3769_v28  ;;  %v2279_v28 = vrot.slane %v4497_v51, %v1087_v46 }
0x1371   : > { %3777 = vmatprep.subr.bf16.mxu1 %v3976_v3 }
0x1439   : > { %v3594_v30 = vpop.f32.mrb[16].mxu0 }
0x143a   : > { %v2159_v24 = vmul.f32 %v3594_v30, %v4159_v47  ;;  %v2139_v31 = vpop.f32.mrb[17].mxu0 }
0x143b   : > { %v2158_v32 = vmul.f32 %v2139_v31, %v4149_v40 }
0x143c   : > { %v2163_v33 = vsel %vm621_vm2, %v2159_v24, 0.0  ;;  %v2284_v24 = vrot.slane %v4497_v51, %v1092_v48 }
0x143d   : > { %v2162_v36 = vsel %vm621_vm2, %v2158_v32, 0.0 }
0x143e   : > { %v2164_v37 = vadd.f32 %v2163_v33, %v2162_v36 }
0x1440   : > { %v3597_v39 = vpop.f32.mrb[18].mxu0 }
0x1441   : > { %v2149_v42 = vpop.f32.mrb[19].mxu0  ;;  %v2161_v41 = vmul.f32 %v3597_v39, %v4169_v52 }
0x1442   : > { %v2160_v43 = vmul.f32 %v2149_v42, %v4162_v50 }
0x1443   : > { %v2167_v20 = vsel %vm621_vm2, %v2161_v41, 0.0 }
0x1444   : > { %v2165_v19 = vsel %vm621_vm2, %v2160_v43, 0.0 }
0x1445   : > { %v2166_v55 = vadd.f32 %v2165_v19, %v2164_v37 }
0x1447   : > { %v2168_v12 = vadd.f32 %v2167_v20, %v2166_v55 }
0x1449   : > { %3607 = vmatmul.mubr.msk.f32.vlgmr.msra.gmra.mrb[22].mxu1 %vm621_vm2, %v2168_v12 }
0x144a   : > { %3628 = vmatprep.mubr.msk.f32.mxu1 %vm3977_vm0, %v3978_v6 }
0x151c   : > { %v2258_v53 = vpop.f32.mrb[22].mxu1 }
0x151d   : > { %v2259_v54 = vadd.f32 %v2258_v53, %v2172_v57  ;;  %v3608_v58 = vpop.f32.mrb[23].mxu1 }
0x151f   : > { %v2262_v25 = vadd.f32 %v2259_v54, %v4437_v62  ;;  %v3258_v62 = vld [vmem:[%s4702_s6 + $0x78] sm:$0xff] }
0x1520   : > { %v4519_v1 = vpack.i.bf16 %v3258_v62, %v3256_v38  ;;  %v3775_v21 = vpack.c.bf16 %v3258_v62, %v3256_v38 }
0x1521   : > { %v2263_v60 = vsel %vm621_vm2, %v2262_v25, 0.0 }
0x1522   : > { %2264 = vadd.xlane.f32.xlu0 %v2263_v60  ;;  %3776 = vmatpush3.bf16.msra.mxu0 %v3775_v21 }
0x1538   : > { %3869 = vrot.lane.b32.xlu0 %v4512_v0, %s3980_s24 }
0x153c   : > { %3874 = vrot.lane.b32.xlu0 %v4519_v1, %s3980_s24 }
0x15af   : > { %v2265_v4 = vpop.xlane.xlu0 %2264 }
0x15b0   : > { %v2266_v13 = vmul.f32 0.03125, %v2265_v4 }
0x15b2   : > { %v2267_v10 = vsub.f32 %v2262_v25, %v2266_v13 }
0x15b3   : > { %v3870_v14 = vpop.permute.xlu0 %3869 }
0x15b4   : > { %v2268_v63 = vmul.f32 %v2267_v10, %v2267_v10  ;;  %v3872_v7 = vunpack.i.h.bf16 %v3870_v14  ;;  %v3871_v9 = vunpack.i.l.bf16 %v3870_v14 }
0x15b6   : > { %v2269_v11 = vsel %vm621_vm2, %v2268_v63, 0.0  ;;  %v3778_v44 = vpack.c.bf16 %v3872_v7, %v3871_v9 }
0x15b7   : > { %2270 = vadd.xlane.f32.xlu1 %v2269_v11  ;;  %v3875_v49 = vpop.permute.xlu0 %3874 }
0x15b8   : > { %v3877_v15 = vunpack.i.h.bf16 %v3875_v49  ;;  %v3876_v16 = vunpack.i.l.bf16 %v3875_v49  ;;  %3779 = vmatpush3.bf16.msra.mxu1 %v3778_v44 }
0x15b9   : > { %3780 = vmatprep.subr.bf16.mxu1 %v3976_v3 }
0x15ba   : > { %v3781_v18 = vpack.c.bf16 %v3877_v15, %v3876_v16 }
0x15bc   : > { %3782 = vmatpush3.bf16.msra.mxu1 %v3781_v18 }
0x15bf   : > { %3629 = vmatmul.mubr.msk.f32.vlgmr.msra.gmra.mrb[24].mxu1 %vm621_vm2, %v4264_v45 }
0x1644   : > { %v2271_v22 = vpop.xlane.xlu1 %2270 }
0x1645   : > { %v2272_v23 = vmul.f32 0.03125, %v2271_v22 }
0x1647   : > { %v2273_v26 = vadd.f32 1e-05, %v2272_v23 }
0x1649   : > { %3942 = vrsqrt.f32 %v2273_v26 }
0x1653   : > { %v3943_v30 = vpop.eup %3942 }
0x1654   : > { %v2275_v31 = vmul.f32 %v3943_v30, %v2267_v10 }
0x1656   : > { %v2280_v32 = vmul.f32 %v2279_v28, %v2275_v31 }
0x1658   : > { %v4534_v33 = vadd.f32 %v2284_v24, %v2280_v32 }
0x165a   : > { %3618 = vmatmul.mubr.msk.f32.vlgmr.msra.gmra.mrb[20].mxu0 %vm621_vm2, %v4534_v33 }
0x1692   : > { %v2441_v45 = vpop.f32.mrb[24].mxu1 }
0x1693   : > { %v3630_v36 = vpop.f32.mrb[25].mxu1  ;;  %3631 = vmatprep.subr.msk.mxu0 %vm621_vm2, %v2441_v45 }
0x1694   : > { %3632 = vmatpush3.xpose.msk.msra.mxu0 %vm621_vm2, %v2441_v45 }
0x1695   : > { %3783 = vmatprep.subr.bf16.mxu0 %v3976_v3 }
0x172d   : > { %v2355_v46 = vpop.f32.mrb[20].mxu0 }
0x172e   : > { %v2445_v37 = vmul.f32 %v2355_v46, %v4149_v40  ;;  %v2446_v48 = vmul.f32 %v2355_v46, %v4159_v47  ;;  %v3619_v39 = vpop.f32.mrb[21].mxu0  ;;  %v2447_v42 = vmul.f32 %v2355_v46, %v4162_v50  ;;  %v2448_v41 = vmul.f32 %v2355_v46, %v4169_v52 }
0x1730   : > { %3633 = vmatprep.mubr.msk.f32.mxu0 %vm621_vm2, %v2445_v37 }
0x1731   : > { %3634 = vmatmul.mubr.msk.f32.vlgmr.msra.gmra.mrb[22].mxu0 %vm621_vm2, %v2446_v48 }
0x1732   : > { %3636 = vmatprep.mubr.msk.f32.mxu0 %vm621_vm2, %v2447_v42 }
0x1735   : > { %3637 = vmatmul.mubr.msk.f32.gmra.mrb[24].mxu0 %vm621_vm2, %v2448_v41 }
0x1736   : > { %3655 = vmatprep.mubr.msk.f32.mxu0 %vm3977_vm0, %v3978_v6 }
0x1804   : > { %v3635_v43 = vpop.f32.mrb[22].mxu0 }
0x1805   : > { %v2536_v19 = vadd.f32 %v3635_v43, %v4297_v2  ;;  %v2530_v55 = vpop.f32.mrb[23].mxu0 }
0x1806   : > { %v2531_v20 = vadd.f32 %v2530_v55, %v4297_v2 }
0x1807   : > { %v2552_v12 = vsel %vm821_vm6, %v2536_v19, -inf }
0x1808   : > { %2553 = vmax.xlane.f32.xlu1 %v2552_v12  ;;  %v3638_v57 = vpop.f32.mrb[24].mxu0  ;;  %v2549_v53 = vsel %vm821_vm6, %v2531_v20, -inf }
0x1809   : > { %v2540_v54 = vpop.f32.mrb[25].mxu0  ;;  %2550 = vmax.xlane.f32.xlu0 %v2549_v53  ;;  %v2546_v25 = vadd.f32 %v3638_v57, %v4297_v2 }
0x180a   : > { %v2541_v58 = vadd.f32 %v2540_v54, %v4297_v2 }
0x180b   : > { %v2558_v34 = vsel %vm821_vm6, %v2546_v25, -inf }
0x180c   : > { %v2555_v60 = vsel %vm821_vm6, %v2541_v58, -inf }
0x180d   : > { %2556 = vmax.xlane.f32.xlu1 %v2555_v60 }
0x1811   : > { %2559 = vmax.xlane.f32.xlu1 %v2558_v34 }
0x1895   : > { %v2554_v61 = vpop.xlane.xlu1 %2553 }
0x1896   : > { %v2562_v38 = vsub.f32 %v2536_v19, %v2554_v61  ;;  %v2551_v62 = vpop.xlane.xlu0 %2550 }
0x1897   : > { %v2561_v4 = vsub.f32 %v2531_v20, %v2551_v62 }
0x1898   : > { %v2567_v13 = vmul.f32 1.442695, %v2562_v38 }
0x1899   : > { %v2565_v10 = vmul.f32 1.442695, %v2561_v4 }
0x189a   : > { %3944 = vpow2.f32 %v2567_v13  ;;  %v2557_v63 = vpop.xlane.xlu1 %2556 }
0x189b   : > { %v2563_v11 = vsub.f32 %v2541_v58, %v2557_v63  ;;  %3946 = vpow2.f32 %v2565_v10 }
0x189d   : > { %v2569_v14 = vmul.f32 1.442695, %v2563_v11 }
0x189e   : > { %v2560_v7 = vpop.xlane.xlu1 %2559 }
0x189f   : > { %v2564_v9 = vsub.f32 %v2546_v25, %v2560_v7  ;;  %3948 = vpow2.f32 %v2569_v14 }
0x18a1   : > { %v2571_v2 = vmul.f32 1.442695, %v2564_v9 }
0x18a3   : > { %3950 = vpow2.f32 %v2571_v2 }
0x18a4   : > { %v3945_v44 = vpop.eup %3944 }
0x18a5   : > { %v2576_v49 = vsel %vm821_vm6, %v3945_v44, 0.0  ;;  %v3947_v15 = vpop.eup %3946 }
0x18a6   : > { %2577 = vadd.xlane.f32.xlu1 %v2576_v49  ;;  %v2573_v16 = vsel %vm821_vm6, %v3947_v15, 0.0 }
0x18a9   : > { %v3949_v17 = vpop.eup %3948 }
0x18aa   : > { %2574 = vadd.xlane.f32.xlu1 %v2573_v16  ;;  %v2579_v21 = vsel %vm821_vm6, %v3949_v17, 0.0 }
0x18ad   : > { %v3951_v18 = vpop.eup %3950 }
0x18ae   : > { %2580 = vadd.xlane.f32.xlu1 %v2579_v21  ;;  %v2582_v22 = vsel %vm821_vm6, %v3951_v18, 0.0  ;;  %v3289_v21 = vld [vmem:[%s4706_s10 + $0x40] sm:$0xff] }
0x18af   : > { %2583 = vadd.xlane.f32.xlu0 %v2582_v22  ;;  %v3290_v22 = vld [vmem:[%s4706_s10 + $0x48] sm:$0xff] }
0x18bf   : > { %2593 = vrot.lane.b32.xlu1 %v2441_v45, %s3980_s24 }
0x18c3   : > { %3884 = vrot.lane.b32.xlu1 %v4519_v1, %s3982_s14 }
0x18c5   : > { %3879 = vrot.lane.b32.xlu0 %v4512_v0, %s3982_s14 }
0x1933   : > { %v2578_v23 = vpop.xlane.xlu1 %2577 }
0x1934   : > { %3952 = vrcp.f32 %v2578_v23  ;;  %v3291_v23 = vld [vmem:[%s4706_s10 + $0x50] sm:$0xff] }
0x1937   : > { %v2575_v26 = vpop.xlane.xlu1 %2574 }
0x1938   : > { %3954 = vrcp.f32 %v2575_v26  ;;  %v3796_v26 = vpack.c.bf16 %v3290_v22, %v3289_v21 }
0x193b   : > { %v2581_v28 = vpop.xlane.xlu1 %2580 }
0x193c   : > { %3956 = vrcp.f32 %v2581_v28  ;;  %v2584_v30 = vpop.xlane.xlu0 %2583  ;;  %v3292_v28 = vld [vmem:[%s4706_s10 + $0x58] sm:$0xff] }
0x193d   : > { %3958 = vrcp.f32 %v2584_v30  ;;  %v3799_v30 = vpack.c.bf16 %v3292_v28, %v3291_v23 }
0x193e   : > { %v3953_v31 = vpop.eup %3952 }
0x193f   : > { %v2594_v24 = vpop.permute.xlu1 %2593  ;;  %v2588_v0 = vmul.f32 %v3953_v31, %v3945_v44  ;;  %v3294_v31 = vld [vmem:[%s4706_s10 + $0x68] sm:$0xff] }
0x1940   : > { %3639 = vmatprep.subr.mxu1 %v2594_v24  ;;  %v3880_v48 = vpop.permute.xlu0 %3879 }
0x1941   : > { %3640 = vmatpush3.msra.mxu1 %v2594_v24  ;;  %v3882_v39 = vunpack.i.h.bf16 %v3880_v48  ;;  %v3881_v42 = vunpack.i.l.bf16 %v3880_v48  ;;  %v3293_v24 = vld [vmem:[%s4706_s10 + $0x60] sm:$0xff] }
0x1942   : > { %v3955_v32 = vpop.eup %3954  ;;  %3789 = vmatprep.subr.bf16.mxu1 %v3976_v3 }
0x1943   : > { %v2586_v45 = vmul.f32 %v3955_v32, %v3947_v15  ;;  %v3784_v41 = vpack.c.bf16 %v3882_v39, %v3881_v42  ;;  %v3885_v43 = vpop.permute.xlu1 %3884  ;;  %v3282_v15 = vld [vmem:[%s4704_s8 + $0x20] sm:$0xff]  ;;  %v3802_v32 = vpack.c.bf16 %v3294_v31, %v3293_v24 }
0x1944   : > { %v3887_v19 = vunpack.i.h.bf16 %v3885_v43  ;;  %v3886_v55 = vunpack.i.l.bf16 %v3885_v43 }
0x1945   : > { %3641 = vmatprep.mubr.msk.f32.mxu1 %vm821_vm6, %v2586_v45  ;;  %3785 = vmatpush3.bf16.msra.mxu0 %v3784_v41  ;;  %v3295_v41 = vld [vmem:[%s4706_s10 + $0x70] sm:$0xff] }
0x1946   : > { %v3957_v1 = vpop.eup %3956  ;;  %3642 = vmatmul.mubr.msk.f32.vlgmr.msra.gmra.mrb[26].mxu1 %vm821_vm6, %v2588_v0  ;;  %3786 = vmatprep.subr.bf16.mxu0 %v3976_v3  ;;  %v3787_v20 = vpack.c.bf16 %v3887_v19, %v3886_v55 }
0x1947   : > { %v3959_v36 = vpop.eup %3958  ;;  %v2590_v46 = vmul.f32 %v3957_v1, %v3949_v17  ;;  %v3285_v17 = vld [vmem:[%s4704_s8 + $0x38] sm:$0xff] }
0x1948   : > { %v2592_v37 = vmul.f32 %v3959_v36, %v3951_v18  ;;  %v2810_v36 = vrot.slane %v4497_v51, %v1621_v5  ;;  %v3296_v5 = vld [vmem:[%s4706_s10 + $0x78] sm:$0xff] }
0x1949   : > { %3644 = vmatprep.mubr.msk.f32.mxu1 %vm821_vm6, %v2590_v46  ;;  %3788 = vmatpush3.bf16.msra.mxu0 %v3787_v20  ;;  %v3805_v43 = vpack.c.bf16 %v3296_v5, %v3295_v41 }
0x194a   : > { %3645 = vmatmul.mubr.msk.f32.gmra.mrb[28].mxu1 %vm821_vm6, %v2592_v37  ;;  %3795 = vmatprep.subr.bf16.mxu0 %v3976_v3  ;;  %v2815_v37 = vrot.slane %v4497_v51, %v1626_v8  ;;  %v3287_v8 = vld [vmem:[%s4705_s9 + $0x1] ss:$0 sm:$0xff] }
0x194b   : > { %3666 = vmatprep.mubr.msk.f32.mxu1 %vm3977_vm0, %v3978_v6 }
0x1a19   : > { %v3643_v12 = vpop.f32.mrb[26].mxu1 }
0x1a1a   : > { %v2694_v57 = vmul.f32 %v3643_v12, %v4159_v47  ;;  %v2674_v53 = vpop.f32.mrb[27].mxu1 }
0x1a1b   : > { %v2693_v54 = vmul.f32 %v2674_v53, %v4149_v40  ;;  %v2707_v40 = vrot.slane %v4497_v51, %v1518_v35  ;;  %v3283_v35 = vld [vmem:[%s4704_s8 + $0x28] sm:$0xff] }
0x1a1c   : > { %v2698_v58 = vsel %vm621_vm2, %v2694_v57, 0.0  ;;  %v3790_v16 = vpack.c.bf16 %v3283_v35, %v3282_v15 }
0x1a1d   : > { %v2697_v25 = vsel %vm621_vm2, %v2693_v54, 0.0  ;;  %v3646_v60 = vpop.f32.mrb[28].mxu1 }
0x1a1e   : > { %v2699_v34 = vadd.f32 %v2698_v58, %v2697_v25  ;;  %v2684_v61 = vpop.f32.mrb[29].mxu1  ;;  %v2696_v38 = vmul.f32 %v3646_v60, %v4169_v52  ;;  %3791 = vmatpush3.bf16.msra.mxu1 %v3790_v16 }
0x1a1f   : > { %v2695_v62 = vmul.f32 %v2684_v61, %v4162_v50  ;;  %3792 = vmatprep.subr.bf16.mxu1 %v3976_v3 }
0x1a20   : > { %v2702_v10 = vsel %vm621_vm2, %v2696_v38, 0.0 }
0x1a21   : > { %v2700_v4 = vsel %vm621_vm2, %v2695_v62, 0.0 }
0x1a22   : > { %v2701_v13 = vadd.f32 %v2700_v4, %v2699_v34  ;;  %v3014_v4 = vld [vmem:[%s4707_s11] sm:$0xff] }
0x1a24   : > { %v2703_v47 = vadd.f32 %v2702_v10, %v2701_v13  ;;  %v3015_v13 = vld [vmem:[%s4707_s11 + $0x8] sm:$0xff] }
0x1a25   : > { %v3808_v10 = vpack.c.bf16 %v3015_v13, %v3014_v4 }
0x1a26   : > { %3656 = vmatmul.mubr.msk.f32.vlgmr.msra.gmra.mrb[26].mxu0 %vm621_vm2, %v2703_v47  ;;  %v3016_v47 = vld [vmem:[%s4707_s11 + $0x10] sm:$0xff] }
0x1a27   : > { %3685 = vmatprep.mubr.msk.f32.mxu0 %vm3977_vm0, %v3978_v6  ;;  %3797 = vmatpush3.bf16.msra.mxu0 %v3796_v26 }
0x1a28   : > { %3798 = vmatprep.subr.bf16.mxu0 %v3976_v3 }
0x1a2b   : > { %3800 = vmatpush3.bf16.msra.mxu0 %v3799_v30 }
0x1a2c   : > { %3801 = vmatprep.subr.bf16.mxu0 %v3976_v3 }
0x1a2f   : > { %3803 = vmatpush3.bf16.msra.mxu0 %v3802_v32 }
0x1a30   : > { %3804 = vmatprep.subr.bf16.mxu0 %v3976_v3 }
0x1a33   : > { %3806 = vmatpush3.bf16.msra.mxu0 %v3805_v43 }
0x1af9   : > { %v2789_v63 = vpop.f32.mrb[26].mxu0 }
0x1afa   : > { %v2790_v11 = vadd.f32 %v2789_v63, %v2707_v40  ;;  %v3657_v52 = vpop.f32.mrb[27].mxu0  ;;  %v3017_v40 = vld [vmem:[%s4707_s11 + $0x18] sm:$0xff] }
0x1afb   : > { %v3811_v63 = vpack.c.bf16 %v3017_v40, %v3016_v47 }
0x1afc   : > { %v2793_v50 = vadd.f32 %v2790_v11, %v4534_v33  ;;  %v3284_v33 = vld [vmem:[%s4704_s8 + $0x30] sm:$0xff] }
0x1afd   : > { %v3793_v18 = vpack.c.bf16 %v3285_v17, %v3284_v33 }
0x1afe   : > { %v2794_v14 = vsel %vm621_vm2, %v2793_v50, 0.0 }
0x1aff   : > { %2795 = vadd.xlane.f32.xlu1 %v2794_v14  ;;  %3794 = vmatpush3.bf16.msra.mxu1 %v3793_v18  ;;  %v3007_v14 = vrot.slane %v4497_v51, %v1815_v56 }
0x1b00   : > { %3807 = vmatprep.subr.bf16.mxu1 %v3976_v3 }
0x1b8c   : > { %v2796_v7 = vpop.xlane.xlu1 %2795 }
0x1b8d   : > { %v2797_v9 = vmul.f32 0.03125, %v2796_v7 }
0x1b8f   : > { %v2798_v2 = vsub.f32 %v2793_v50, %v2797_v9  ;;  %v3012_v9 = vrot.slane %v4497_v51, %v1820_v59 }
0x1b91   : > { %v2799_v44 = vmul.f32 %v2798_v2, %v2798_v2 }
0x1b93   : > { %v2800_v49 = vsel %vm621_vm2, %v2799_v44, 0.0 }
0x1b94   : > { %2801 = vadd.xlane.f32.xlu0 %v2800_v49  ;;  %v3299_v49 = vld [vmem:[%s4708_s12] ss:$0 sm:$0xff] }
0x1c21   : > { %v2802_v45 = vpop.xlane.xlu0 %2801 }
0x1c22   : > { %v2803_v0 = vmul.f32 0.03125, %v2802_v45 }
0x1c24   : > { %v2804_v1 = vadd.f32 1e-05, %v2803_v0 }
0x1c26   : > { %3960 = vrsqrt.f32 %v2804_v1 }
0x1c30   : > { %v3961_v46 = vpop.eup %3960 }
0x1c31   : > { %v2806_v48 = vmul.f32 %v3961_v46, %v2798_v2 }
0x1c33   : > { %v2811_v39 = vmul.f32 %v2810_v36, %v2806_v48 }
0x1c35   : > { %v2816_v42 = vadd.f32 %v2815_v37, %v2811_v39 }
0x1c37   : > { %3667 = vmatmul.mubr.msk.f32.vlgmr.msra.gmra.mrb[30].mxu1 %vm621_vm2, %v2816_v42 }
0x1c38   : > { %3696 = vmatprep.mubr.msk.f32.mxu1 %vm3977_vm0, %v3978_v6  ;;  %v3297_v6 = vld [vmem:[%s4703_s7 + $0x18] ss:$0 sm:$0xff]  ;;  %3809 = vmatpush3.bf16.msra.mxu1 %v3808_v10 }
0x1c39   : > { %3810 = vmatprep.subr.bf16.mxu1 %v3976_v3 }
0x1c3c   : > { %3812 = vmatpush3.bf16.msra.mxu1 %v3811_v63 }
0x1d0a   : > { %v2899_v19 = vpop.f32.mrb[30].mxu1 }
0x1d0b   : > { %v2900_v55 = vadd.f32 %v3287_v8, %v2899_v19  ;;  %v3668_v20 = vpop.f32.mrb[31].mxu1 }
0x1d0d   : > { %v2903_v12 = vmax.f32 %v2900_v55, 0.0 }
0x1d0f   : > { %3686 = vmatmul.mubr.msk.f32.vlgmr.msra.gmra.mrb[28].mxu0 %vm497_vm1, %v2903_v12 }
0x1de2   : > { %v2986_v57 = vpop.f32.mrb[28].mxu0 }
0x1de3   : > { %v2987_v53 = vadd.f32 %v3297_v6, %v2986_v57  ;;  %v3687_v54 = vpop.f32.mrb[29].mxu0 }
0x1de5   : > { %v2990_v58 = vadd.f32 %v2987_v53, %v2816_v42 }
0x1de7   : > { %v2991_v25 = vsel %vm621_vm2, %v2990_v58, 0.0 }
0x1de8   : > { %2992 = vadd.xlane.f32.xlu0 %v2991_v25 }
0x1e75   : > { %v2993_v60 = vpop.xlane.xlu0 %2992 }
0x1e76   : > { %v2994_v34 = vmul.f32 0.03125, %v2993_v60 }
0x1e78   : > { %v2995_v61 = vsub.f32 %v2990_v58, %v2994_v34 }
0x1e7a   : > { %v2996_v38 = vmul.f32 %v2995_v61, %v2995_v61 }
0x1e7c   : > { %v2997_v62 = vsel %vm621_vm2, %v2996_v38, 0.0 }
0x1e7d   : > { %2998 = vadd.xlane.f32.xlu1 %v2997_v62 }
0x1f0a   : > { %v2999_v11 = vpop.xlane.xlu1 %2998 }
0x1f0b   : > { %v3000_v52 = vmul.f32 0.03125, %v2999_v11 }
0x1f0d   : > { %v3001_v50 = vadd.f32 1e-05, %v3000_v52 }
0x1f0f   : > { %3962 = vrsqrt.f32 %v3001_v50 }
0x1f19   : > { %v3963_v7 = vpop.eup %3962 }
0x1f1a   : > { %v3003_v3 = vmul.f32 %v3963_v7, %v2995_v61 }
0x1f1c   : > { %v3008_v2 = vmul.f32 %v3007_v14, %v3003_v3 }
0x1f1e   : > { %v3013_v44 = vadd.f32 %v3012_v9, %v3008_v2 }
0x1f20   : > { %3697 = vmatmul.mubr.msk.f32.vlgmr.msra.gmra.mrb[32].mxu1 %vm621_vm2, %v3013_v44 }
0x1ff3   : > { %v3094_v15 = vpop.f32.mrb[32].mxu1 }
0x1ff4   : > { %v3095_v35 = vadd.f32 %v3299_v49, %v3094_v15  ;;  %v3698_v16 = vpop.f32.mrb[33].mxu1 }
0x1ff6   : > { %v3104_v56 = vsel %vm3098_vm7, -inf, %v3095_v35  ;;  %v3101_v27 = vsel %vm3098_vm7, %v3095_v35, -inf }
0x1ff7   : > { %3105 = vmax.xlane.f32.xlu1 %v3104_v56  ;;  %3102 = vmax.xlane.f32.xlu0 %v3101_v27 }
0x2084   : > { %v3106_v59 = vpop.xlane.xlu1 %3105  ;;  %v3103_v51 = vpop.xlane.xlu0 %3102 }
0x2085   : > { %v3107_v33 = vsel %vm3098_vm7, %v3103_v51, %v3106_v59 }
0x2086   : > { %v3108_v17 = vsub.f32 %v3095_v35, %v3107_v33 }
0x2088   : > { %v3109_v18 = vmul.f32 1.442695, %v3108_v17 }
0x208a   : > { %3964 = vpow2.f32 %v3109_v18 }
0x2094   : > { %v3965_v21 = vpop.eup %3964 }
0x2095   : > { %v3114_v22 = vsel %vm3098_vm7, 0.0, %v3965_v21  ;;  %v3111_v23 = vsel %vm3098_vm7, %v3965_v21, 0.0 }
0x2096   : > { %3115 = vadd.xlane.f32.xlu1 %v3114_v22  ;;  %3112 = vadd.xlane.f32.xlu0 %v3111_v23 }
0x2123   : > { %v3116_v26 = vpop.xlane.xlu1 %3115  ;;  %v3113_v28 = vpop.xlane.xlu0 %3112 }
0x2124   : > { %v3117_v30 = vsel %vm3098_vm7, %v3113_v28, %v3116_v26 }
0x2125   : > { %3966 = vrcp.f32 %v3117_v30 }
0x212f   : > { %v3967_v24 = vpop.eup %3966 }
0x2130   : > { %v3119_v31 = vmul.f32 %v3967_v24, %v3965_v21 }
0x2132   : > { %3120 = vst [vmem:[%s486_s23] sm:$0xff] %v3119_v31 }
0x2133 PF: > { %s23_s25 = sadd.s32 1, %s3974_s25  }
0x2134   : > { %p20_p4 = scmp.ge.s32.totalorder %s23_s25, 4  }
0x2136   :  { %22 = sbr.rel (!%p20_p4) target bundleno = 1 (0x1), region = 116 }

</bundles_post_ra>
